<compile_context>
chip_gen: v7x
topology: tpu7x:2x2x1
jax: 0.10.0
libtpu: 0.0.40
codegen_flags: <defaults>
</compile_context>

<pallas_src>
import functools

import jax
import jax.numpy as jnp
from jax.experimental import pallas as pl
from jax.experimental.pallas import tpu as pltpu


def _round_up(x, m):
    return (x + m - 1) // m * m


# ----------------------------------------------------------------------------
# Pallas kernel: fused (transposed) matmul + bias + activation
#   a_ref : (Kp, TM)  bf16   im2col slab (contraction dim, pixel tile)
#   w_ref : (Cp, Kp)  bf16   flattened conv weights
#   b_ref : (Cp, 1)   f32    bias
#   s_ref : (Cp, 1)   f32    per-row leaky slope (0.0 => ReLU, 0.2 => LeakyReLU)
#   o_ref : (Cp, TM)         output (lane-dense along pixels)
# ----------------------------------------------------------------------------
def _conv_mm_kernel(a_ref, w_ref, b_ref, s_ref, o_ref, *, act):
    acc = jnp.dot(w_ref[...], a_ref[...], preferred_element_type=jnp.float32)
    acc = acc + b_ref[...]                       # (Cp, 1) broadcast over lanes
    if act == "leaky":
        acc = jnp.where(acc > 0.0, acc, s_ref[...] * acc)
    elif act == "tanh":
        acc = jnp.tanh(acc)
    # act == "none": identity
    o_ref[...] = acc.astype(o_ref.dtype)


def _conv_matmul(a_t, w_flat, bias, slope, act, out_dtype, block_m):
    """a_t: (Kp, Mp) bf16, w_flat: (Cp, Kp) bf16, bias/slope: (Cp,1) f32 -> (Cp, Mp)."""
    Kp, Mp = a_t.shape
    Cp = w_flat.shape[0]
    grid = (Mp // block_m,)

    out_itemsize = 4 if out_dtype == jnp.float32 else 2
    cost = pl.CostEstimate(
        flops=2 * Mp * Kp * Cp,
        transcendentals=Mp * Cp if act == "tanh" else 0,
        bytes_accessed=a_t.size * 2 + w_flat.size * 2 + Mp * Cp * out_itemsize,
    )

    return pl.pallas_call(
        functools.partial(_conv_mm_kernel, act=act),
        out_shape=jax.ShapeDtypeStruct((Cp, Mp), out_dtype),
        grid=grid,
        in_specs=[
            pl.BlockSpec((Kp, block_m), lambda i: (0, i)),   # im2col tile (pipelined)
            pl.BlockSpec((Cp, Kp), lambda i: (0, 0)),        # weights resident
            pl.BlockSpec((Cp, 1), lambda i: (0, 0)),         # bias resident
            pl.BlockSpec((Cp, 1), lambda i: (0, 0)),         # slope resident
        ],
        out_specs=pl.BlockSpec((Cp, block_m), lambda i: (0, i)),
        compiler_params=pltpu.CompilerParams(
            dimension_semantics=("parallel",),               # megacore-shard M tiles
            vmem_limit_bytes=32 * 1024 * 1024,               # safe on v5e/v6e/v7x
        ),
        cost_estimate=cost,
    )(a_t, w_flat, bias, slope)


# ----------------------------------------------------------------------------
# im2col in channels-major layout: (C, M) -> (Kp, Mp), rows ordered (ky, kx, c)
# ----------------------------------------------------------------------------
# TODO(synk): for large images, move im2col into the kernel (loop over the 9
# taps with shifted index_maps) to remove the 9x HBM read amplification.
def _im2col_t(x_cm, spatial, k_pad, m_pad):
    N, H, W = spatial
    C = x_cm.shape[0]
    x = x_cm.reshape(C, N, H, W)
    xp = jnp.pad(x, ((0, 0), (0, 0), (1, 1), (1, 1)))
    patches = [xp[:, :, dy:dy + H, dx:dx + W] for dy in range(3) for dx in range(3)]
    a_t = jnp.concatenate(patches, axis=0).reshape(9 * C, N * H * W)
    a_t = jnp.pad(a_t, ((0, k_pad - 9 * C), (0, m_pad - N * H * W)))
    return a_t.astype(jnp.bfloat16)


# ----------------------------------------------------------------------------
# 3x3 "same" conv = im2col + fused transposed matmul kernel
#   x_cm : (Cin, M) activations in flattened (C, N, H, W) layout
#   w    : (Cout, Cin, 3, 3) (PyTorch layout), b: (Cout,)
# returns (Cout, M)
# ----------------------------------------------------------------------------
def _conv3x3(x_cm, spatial, w, b, act, slope_vec=None,
             out_dtype=jnp.bfloat16, block_m=256):
    Cout, Cin = w.shape[0], w.shape[1]
    N, H, W = spatial
    M = N * H * W
    Kp = _round_up(9 * Cin, 128)          # MXU-aligned contraction dim
    Mp = _round_up(M, block_m)
    Cp = _round_up(Cout, 8)               # sublane-aligned output rows

    a_t = _im2col_t(x_cm, spatial, Kp, Mp)

    # Flatten weight so column ordering matches im2col rows: (ky, kx, cin).
    w_flat = w.transpose(0, 2, 3, 1).reshape(Cout, 9 * Cin)
    w_flat = jnp.pad(w_flat, ((0, Cp - Cout), (0, Kp - 9 * Cin))).astype(jnp.bfloat16)
    bias = jnp.pad(b, (0, Cp - Cout)).reshape(Cp, 1).astype(jnp.float32)
    if slope_vec is None:
        slope = jnp.zeros((Cp, 1), jnp.float32)
    else:
        slope = jnp.pad(slope_vec, (0, Cp - Cout)).reshape(Cp, 1).astype(jnp.float32)

    out = _conv_matmul(a_t, w_flat, bias, slope, act, out_dtype, block_m)
    return out[:Cout, :M]


# ----------------------------------------------------------------------------
# Parameter construction
# ----------------------------------------------------------------------------
def _init_conv(key, cout, cin):
    kw, kb = jax.random.split(key)
    fan_in = cin * 9
    w = jax.random.normal(kw, (cout, cin, 3, 3), jnp.float32) / jnp.sqrt(fan_in)
    b = jax.random.normal(kb, (cout,), jnp.float32) * 0.01
    return w, b


def make_generator_params(key, c, hid):
    k1, k2 = jax.random.split(key)
    w1, b1 = _init_conv(k1, hid, c)
    w2, b2 = _init_conv(k2, c, hid)
    return {"w1": w1, "b1": b1, "w2": w2, "b2": b2}


def make_discriminator_params(key, c, hid):
    k1, k2 = jax.random.split(key)
    w1, b1 = _init_conv(k1, hid, c)
    w2, b2 = _init_conv(k2, 1, hid)
    return {"w1": w1, "b1": b1, "w2": w2, "b2": b2}


# ----------------------------------------------------------------------------
# CycleGAN forward (mirrors the PyTorch module's forward())
# ----------------------------------------------------------------------------
def cyclegan_forward(params, x, block_m=256):
    N, C, H, W = x.shape
    spatial = (N, H, W)
    M = N * H * W
    HID = params["netAB"]["w1"].shape[0]

    # Single NCHW -> channels-major-flat conversion at the input boundary.
    x_cm = x.transpose(1, 0, 2, 3).reshape(C, M)

    # --- Stage 1: the 4 first-layer convs all read x -> ONE Cout=4*HID matmul
    w1 = jnp.concatenate([params["netAB"]["w1"], params["netBA"]["w1"],
                          params["discA"]["w1"], params["discB"]["w1"]], axis=0)
    b1 = jnp.concatenate([params["netAB"]["b1"], params["netBA"]["b1"],
                          params["discA"]["b1"], params["discB"]["b1"]], axis=0)
    slopes = jnp.concatenate([jnp.zeros((2 * HID,), jnp.float32),      # ReLU (gens)
                              jnp.full((2 * HID,), 0.2, jnp.float32)])  # LeakyReLU (discs)
    h_all = _conv3x3(x_cm, spatial, w1, b1, act="leaky", slope_vec=slopes,
                     out_dtype=jnp.bfloat16, block_m=block_m)           # (4*HID, M)
    h_ab = h_all[0 * HID:1 * HID]
    h_ba = h_all[1 * HID:2 * HID]
    h_da = h_all[2 * HID:3 * HID]
    h_db = h_all[3 * HID:4 * HID]

    # --- Generator second layers (tanh) -> fakeB = netAB(x), fakeA = netBA(x)
    fakeB_cm = _conv3x3(h_ab, spatial, params["netAB"]["w2"], params["netAB"]["b2"],
                        act="tanh", out_dtype=jnp.float32, block_m=block_m)
    fakeA_cm = _conv3x3(h_ba, spatial, params["netBA"]["w2"], params["netBA"]["b2"],
                        act="tanh", out_dtype=jnp.float32, block_m=block_m)

    # --- Reconstruction passes: recA = netBA(fakeB), recB = netAB(fakeA)
    def gen_apply(gp, inp_cm):
        h = _conv3x3(inp_cm, spatial, gp["w1"], gp["b1"], act="leaky",
                     slope_vec=jnp.zeros((gp["w1"].shape[0],), jnp.float32),
                     out_dtype=jnp.bfloat16, block_m=block_m)
        return _conv3x3(h, spatial, gp["w2"], gp["b2"], act="tanh",
                        out_dtype=jnp.float32, block_m=block_m)

    recA_cm = gen_apply(params["netBA"], fakeB_cm)
    recB_cm = gen_apply(params["netAB"], fakeA_cm)

    # --- Discriminator second layers (linear, Cout=1)
    dA_cm = _conv3x3(h_da, spatial, params["discA"]["w2"], params["discA"]["b2"],
                     act="none", out_dtype=jnp.float32, block_m=block_m)
    dB_cm = _conv3x3(h_db, spatial, params["discB"]["w2"], params["discB"]["b2"],
                     act="none", out_dtype=jnp.float32, block_m=block_m)

    # idtA = netBA(x) and idtB = netAB(x) are bit-identical to fakeA / fakeB.
    idtA_cm, idtB_cm = fakeA_cm, fakeB_cm

    # Channels-major-flat -> NCHW only at the output boundary.
    def to_nchw(t_cm, c):
        return t_cm.reshape(c, N, H, W).transpose(1, 0, 2, 3)

    return (to_nchw(fakeA_cm, C), to_nchw(fakeB_cm, C),
            to_nchw(recA_cm, C), to_nchw(recB_cm, C),
            to_nchw(idtA_cm, C), to_nchw(idtB_cm, C),
            to_nchw(dA_cm, 1), to_nchw(dB_cm, 1))


# ----------------------------------------------------------------------------
# Pure-JAX f32 reference (for correctness check)
# ----------------------------------------------------------------------------
def _ref_conv3x3(x, w, b):
    y = jax.lax.conv_general_dilated(
        x, w, window_strides=(1, 1), padding=((1, 1), (1, 1)),
        dimension_numbers=("NCHW", "OIHW", "NCHW"))
    return y + b.reshape(1, -1, 1, 1)


def _ref_gen(p, x):
    h = jnp.maximum(_ref_conv3x3(x, p["w1"], p["b1"]), 0.0)
    return jnp.tanh(_ref_conv3x3(h, p["w2"], p["b2"]))


def _ref_disc(p, x):
    h = _ref_conv3x3(x, p["w1"], p["b1"])
    h = jnp.where(h > 0, h, 0.2 * h)
    return _ref_conv3x3(h, p["w2"], p["b2"])


def _ref_forward(params, x):
    fakeA = _ref_gen(params["netBA"], x)
    fakeB = _ref_gen(params["netAB"], x)
    recA = _ref_gen(params["netBA"], fakeB)
    recB = _ref_gen(params["netAB"], fakeA)
    return (fakeA, fakeB, recA, recB, fakeA, fakeB,
            _ref_disc(params["discA"], x), _ref_disc(params["discB"], x))


if __name__ == "__main__":
    N, C, H, W = 2, 4, 16, 16
    HID = 32

    root = jax.random.PRNGKey(0)
    kx, kAB, kBA, kDA, kDB = jax.random.split(root, 5)

    params = {
        "netAB": make_generator_params(kAB, C, HID),
        "netBA": make_generator_params(kBA, C, HID),
        "discA": make_discriminator_params(kDA, C, HID),
        "discB": make_discriminator_params(kDB, C, HID),
    }

    x = jax.random.normal(kx, (N, C, H, W), jnp.float32)

    outs = jax.jit(cyclegan_forward)(params, x)
    outs = jax.block_until_ready(outs)

    # Shape checks mirroring the PyTorch semantics.
    for t in outs[:6]:
        assert t.shape == (N, C, H, W), t.shape
    for t in outs[6:]:
        assert t.shape == (N, 1, H, W), t.shape
    assert all(bool(jnp.all(jnp.isfinite(t.astype(jnp.float32)))) for t in outs)

    # Numerical check against the pure-JAX f32 reference (bf16 matmul tolerance).
    refs = jax.jit(_ref_forward)(params, x)
    refs = jax.block_until_ready(refs)
    for got, want in zip(outs, refs):
        err = float(jnp.max(jnp.abs(got.astype(jnp.float32) - want)))
        assert err < 1e-1, f"mismatch vs reference: max abs err {err}"

    print("KERNEL_OK")
</pallas_src>

<mosaic_0001>
module attributes {stable_mosaic.version = 11 : i64} {
  func.func @_conv_mm_kernel(%arg0: i32, %arg1: memref<128x256xbf16, #tpu.memory_space<vmem>>, %arg2: memref<128x128xbf16, #tpu.memory_space<vmem>>, %arg3: memref<128x1xf32, #tpu.memory_space<vmem>>, %arg4: memref<128x1xf32, #tpu.memory_space<vmem>>, %arg5: memref<128x256xbf16, #tpu.memory_space<vmem>>) attributes {dimension_semantics = [#tpu.dimension_semantics<parallel>], iteration_bounds = array<i64: 2>, scalar_prefetch = 0 : i64, scratch_operands = 0 : i64, tpu.core_type = #tpu.core_type<tc>, window_params = [{transform_indices = @transform_0, window_bounds = array<i64: 128, 256>}, {pipeline_mode = #tpu.pipeline_mode<synchronous>, transform_indices = @transform_1, window_bounds = array<i64: 128, 128>}, {pipeline_mode = #tpu.pipeline_mode<synchronous>, transform_indices = @transform_2, window_bounds = array<i64: 128, 1>}, {pipeline_mode = #tpu.pipeline_mode<synchronous>, transform_indices = @transform_3, window_bounds = array<i64: 128, 1>}, {transform_indices = @transform_4, window_bounds = array<i64: 128, 256>}]} {
    %c0 = arith.constant 0 : index
    %c0_0 = arith.constant 0 : index
    %0 = vector.load %arg2[%c0, %c0_0] : memref<128x128xbf16, #tpu.memory_space<vmem>>, vector<128x128xbf16>
    %c0_1 = arith.constant 0 : index
    %c0_2 = arith.constant 0 : index
    %1 = vector.load %arg1[%c0_1, %c0_2] : memref<128x256xbf16, #tpu.memory_space<vmem>>, vector<128x256xbf16>
    %cst = arith.constant dense<0.000000e+00> : vector<128x256xf32>
    %2 = tpu.matmul %0, %1, %cst {dimension_numbers = #tpu.dot_dimension_numbers<[1], [0], [0], [1], [0, 0, 1, 1], [], []>} : vector<128x128xbf16>, vector<128x256xbf16>, vector<128x256xf32> -> vector<128x256xf32>
    %c0_3 = arith.constant 0 : index
    %c0_4 = arith.constant 0 : index
    %3 = vector.load %arg3[%c0_3, %c0_4] : memref<128x1xf32, #tpu.memory_space<vmem>>, vector<128x1xf32>
    %4 = vector.broadcast %3 : vector<128x1xf32> to vector<128x256xf32>
    %5 = arith.addf %2, %4 : vector<128x256xf32>
    %cst_5 = arith.constant 0.000000e+00 : f32
    %6 = vector.broadcast %cst_5 : f32 to vector<128x256xf32>
    %7 = arith.cmpf ogt, %5, %6 : vector<128x256xf32>
    %c0_6 = arith.constant 0 : index
    %c0_7 = arith.constant 0 : index
    %8 = vector.load %arg4[%c0_6, %c0_7] : memref<128x1xf32, #tpu.memory_space<vmem>>, vector<128x1xf32>
    %9 = vector.broadcast %8 : vector<128x1xf32> to vector<128x256xf32>
    %10 = arith.mulf %9, %5 : vector<128x256xf32>
    %11 = arith.select %7, %5, %10 : vector<128x256xi1>, vector<128x256xf32>
    %12 = arith.truncf %11 : vector<128x256xf32> to vector<128x256xbf16>
    %c0_8 = arith.constant 0 : index
    %c0_9 = arith.constant 0 : index
    %13 = vector.load %arg5[%c0_8, %c0_9] : memref<128x256xbf16, #tpu.memory_space<vmem>>, vector<128x256xbf16>
    tpu.vector_store %arg5[%c0_8, %c0_9], %12 {strides = array<i32>} : memref<128x256xbf16, #tpu.memory_space<vmem>>, vector<128x256xbf16>,
    return
  }
  func.func @transform_0(%arg0: i32) -> (i32, i32) {
    %c0_i32 = arith.constant 0 : i32
    %c0_i32_0 = arith.constant 0 : i32
    return %c0_i32, %arg0 : i32, i32
  }
  func.func @transform_1(%arg0: i32) -> (i32, i32) {
    %c0_i32 = arith.constant 0 : i32
    %c0_i32_0 = arith.constant 0 : i32
    %c0_i32_1 = arith.constant 0 : i32
    return %c0_i32, %c0_i32_0 : i32, i32
  }
  func.func @transform_2(%arg0: i32) -> (i32, i32) {
    %c0_i32 = arith.constant 0 : i32
    %c0_i32_0 = arith.constant 0 : i32
    %c0_i32_1 = arith.constant 0 : i32
    return %c0_i32, %c0_i32_0 : i32, i32
  }
  func.func @transform_3(%arg0: i32) -> (i32, i32) {
    %c0_i32 = arith.constant 0 : i32
    %c0_i32_0 = arith.constant 0 : i32
    %c0_i32_1 = arith.constant 0 : i32
    return %c0_i32, %c0_i32_0 : i32, i32
  }
  func.func @transform_4(%arg0: i32) -> (i32, i32) {
    %c0_i32 = arith.constant 0 : i32
    %c0_i32_0 = arith.constant 0 : i32
    return %c0_i32, %arg0 : i32, i32
  }
}

module attributes {stable_mosaic.version = 11 : i64} {
  func.func @_conv_mm_kernel(%arg0: i32, %arg1: memref<384x256xbf16, #tpu.memory_space<vmem>>, %arg2: memref<8x384xbf16, #tpu.memory_space<vmem>>, %arg3: memref<8x1xf32, #tpu.memory_space<vmem>>, %arg4: memref<8x1xf32, #tpu.memory_space<vmem>>, %arg5: memref<8x256xf32, #tpu.memory_space<vmem>>) attributes {dimension_semantics = [#tpu.dimension_semantics<parallel>], iteration_bounds = array<i64: 2>, scalar_prefetch = 0 : i64, scratch_operands = 0 : i64, tpu.core_type = #tpu.core_type<tc>, window_params = [{transform_indices = @transform_0, window_bounds = array<i64: 384, 256>}, {pipeline_mode = #tpu.pipeline_mode<synchronous>, transform_indices = @transform_1, window_bounds = array<i64: 8, 384>}, {pipeline_mode = #tpu.pipeline_mode<synchronous>, transform_indices = @transform_2, window_bounds = array<i64: 8, 1>}, {pipeline_mode = #tpu.pipeline_mode<synchronous>, transform_indices = @transform_3, window_bounds = array<i64: 8, 1>}, {transform_indices = @transform_4, window_bounds = array<i64: 8, 256>}]} {
    %c0 = arith.constant 0 : index
    %c0_0 = arith.constant 0 : index
    %0 = vector.load %arg2[%c0, %c0_0] : memref<8x384xbf16, #tpu.memory_space<vmem>>, vector<8x384xbf16>
    %c0_1 = arith.constant 0 : index
    %c0_2 = arith.constant 0 : index
    %1 = vector.load %arg1[%c0_1, %c0_2] : memref<384x256xbf16, #tpu.memory_space<vmem>>, vector<384x256xbf16>
    %cst = arith.constant dense<0.000000e+00> : vector<8x256xf32>
    %2 = tpu.matmul %0, %1, %cst {dimension_numbers = #tpu.dot_dimension_numbers<[1], [0], [0], [1], [0, 0, 1, 1], [], []>} : vector<8x384xbf16>, vector<384x256xbf16>, vector<8x256xf32> -> vector<8x256xf32>
    %c0_3 = arith.constant 0 : index
    %c0_4 = arith.constant 0 : index
    %3 = vector.load %arg3[%c0_3, %c0_4] : memref<8x1xf32, #tpu.memory_space<vmem>>, vector<8x1xf32>
    %4 = vector.broadcast %3 : vector<8x1xf32> to vector<8x256xf32>
    %5 = arith.addf %2, %4 : vector<8x256xf32>
    %c0_5 = arith.constant 0 : index
    %c0_6 = arith.constant 0 : index
    %6 = vector.load %arg5[%c0_5, %c0_6] : memref<8x256xf32, #tpu.memory_space<vmem>>, vector<8x256xf32>
    tpu.vector_store %arg5[%c0_5, %c0_6], %5 {strides = array<i32>} : memref<8x256xf32, #tpu.memory_space<vmem>>, vector<8x256xf32>,
    return
  }
  func.func @transform_0(%arg0: i32) -> (i32, i32) {
    %c0_i32 = arith.constant 0 : i32
    %c0_i32_0 = arith.constant 0 : i32
    return %c0_i32, %arg0 : i32, i32
  }
  func.func @transform_1(%arg0: i32) -> (i32, i32) {
    %c0_i32 = arith.constant 0 : i32
    %c0_i32_0 = arith.constant 0 : i32
    %c0_i32_1 = arith.constant 0 : i32
    return %c0_i32, %c0_i32_0 : i32, i32
  }
  func.func @transform_2(%arg0: i32) -> (i32, i32) {
    %c0_i32 = arith.constant 0 : i32
    %c0_i32_0 = arith.constant 0 : i32
    %c0_i32_1 = arith.constant 0 : i32
    return %c0_i32, %c0_i32_0 : i32, i32
  }
  func.func @transform_3(%arg0: i32) -> (i32, i32) {
    %c0_i32 = arith.constant 0 : i32
    %c0_i32_0 = arith.constant 0 : i32
    %c0_i32_1 = arith.constant 0 : i32
    return %c0_i32, %c0_i32_0 : i32, i32
  }
  func.func @transform_4(%arg0: i32) -> (i32, i32) {
    %c0_i32 = arith.constant 0 : i32
    %c0_i32_0 = arith.constant 0 : i32
    return %c0_i32, %arg0 : i32, i32
  }
}

module attributes {stable_mosaic.version = 11 : i64} {
  func.func @_conv_mm_kernel(%arg0: i32, %arg1: memref<384x256xbf16, #tpu.memory_space<vmem>>, %arg2: memref<8x384xbf16, #tpu.memory_space<vmem>>, %arg3: memref<8x1xf32, #tpu.memory_space<vmem>>, %arg4: memref<8x1xf32, #tpu.memory_space<vmem>>, %arg5: memref<8x256xf32, #tpu.memory_space<vmem>>) attributes {dimension_semantics = [#tpu.dimension_semantics<parallel>], iteration_bounds = array<i64: 2>, scalar_prefetch = 0 : i64, scratch_operands = 0 : i64, tpu.core_type = #tpu.core_type<tc>, window_params = [{transform_indices = @transform_0, window_bounds = array<i64: 384, 256>}, {pipeline_mode = #tpu.pipeline_mode<synchronous>, transform_indices = @transform_1, window_bounds = array<i64: 8, 384>}, {pipeline_mode = #tpu.pipeline_mode<synchronous>, transform_indices = @transform_2, window_bounds = array<i64: 8, 1>}, {pipeline_mode = #tpu.pipeline_mode<synchronous>, transform_indices = @transform_3, window_bounds = array<i64: 8, 1>}, {transform_indices = @transform_4, window_bounds = array<i64: 8, 256>}]} {
    %c0 = arith.constant 0 : index
    %c0_0 = arith.constant 0 : index
    %0 = vector.load %arg2[%c0, %c0_0] : memref<8x384xbf16, #tpu.memory_space<vmem>>, vector<8x384xbf16>
    %c0_1 = arith.constant 0 : index
    %c0_2 = arith.constant 0 : index
    %1 = vector.load %arg1[%c0_1, %c0_2] : memref<384x256xbf16, #tpu.memory_space<vmem>>, vector<384x256xbf16>
    %cst = arith.constant dense<0.000000e+00> : vector<8x256xf32>
    %2 = tpu.matmul %0, %1, %cst {dimension_numbers = #tpu.dot_dimension_numbers<[1], [0], [0], [1], [0, 0, 1, 1], [], []>} : vector<8x384xbf16>, vector<384x256xbf16>, vector<8x256xf32> -> vector<8x256xf32>
    %c0_3 = arith.constant 0 : index
    %c0_4 = arith.constant 0 : index
    %3 = vector.load %arg3[%c0_3, %c0_4] : memref<8x1xf32, #tpu.memory_space<vmem>>, vector<8x1xf32>
    %4 = vector.broadcast %3 : vector<8x1xf32> to vector<8x256xf32>
    %5 = arith.addf %2, %4 : vector<8x256xf32>
    %6 = math.tanh %5 : vector<8x256xf32>
    %c0_5 = arith.constant 0 : index
    %c0_6 = arith.constant 0 : index
    %7 = vector.load %arg5[%c0_5, %c0_6] : memref<8x256xf32, #tpu.memory_space<vmem>>, vector<8x256xf32>
    tpu.vector_store %arg5[%c0_5, %c0_6], %6 {strides = array<i32>} : memref<8x256xf32, #tpu.memory_space<vmem>>, vector<8x256xf32>,
    return
  }
  func.func @transform_0(%arg0: i32) -> (i32, i32) {
    %c0_i32 = arith.constant 0 : i32
    %c0_i32_0 = arith.constant 0 : i32
    return %c0_i32, %arg0 : i32, i32
  }
  func.func @transform_1(%arg0: i32) -> (i32, i32) {
    %c0_i32 = arith.constant 0 : i32
    %c0_i32_0 = arith.constant 0 : i32
    %c0_i32_1 = arith.constant 0 : i32
    return %c0_i32, %c0_i32_0 : i32, i32
  }
  func.func @transform_2(%arg0: i32) -> (i32, i32) {
    %c0_i32 = arith.constant 0 : i32
    %c0_i32_0 = arith.constant 0 : i32
    %c0_i32_1 = arith.constant 0 : i32
    return %c0_i32, %c0_i32_0 : i32, i32
  }
  func.func @transform_3(%arg0: i32) -> (i32, i32) {
    %c0_i32 = arith.constant 0 : i32
    %c0_i32_0 = arith.constant 0 : i32
    %c0_i32_1 = arith.constant 0 : i32
    return %c0_i32, %c0_i32_0 : i32, i32
  }
  func.func @transform_4(%arg0: i32) -> (i32, i32) {
    %c0_i32 = arith.constant 0 : i32
    %c0_i32_0 = arith.constant 0 : i32
    return %c0_i32, %arg0 : i32, i32
  }
}

module attributes {stable_mosaic.version = 11 : i64} {
  func.func @_conv_mm_kernel(%arg0: i32, %arg1: memref<128x256xbf16, #tpu.memory_space<vmem>>, %arg2: memref<32x128xbf16, #tpu.memory_space<vmem>>, %arg3: memref<32x1xf32, #tpu.memory_space<vmem>>, %arg4: memref<32x1xf32, #tpu.memory_space<vmem>>, %arg5: memref<32x256xbf16, #tpu.memory_space<vmem>>) attributes {dimension_semantics = [#tpu.dimension_semantics<parallel>], iteration_bounds = array<i64: 2>, scalar_prefetch = 0 : i64, scratch_operands = 0 : i64, tpu.core_type = #tpu.core_type<tc>, window_params = [{transform_indices = @transform_0, window_bounds = array<i64: 128, 256>}, {pipeline_mode = #tpu.pipeline_mode<synchronous>, transform_indices = @transform_1, window_bounds = array<i64: 32, 128>}, {pipeline_mode = #tpu.pipeline_mode<synchronous>, transform_indices = @transform_2, window_bounds = array<i64: 32, 1>}, {pipeline_mode = #tpu.pipeline_mode<synchronous>, transform_indices = @transform_3, window_bounds = array<i64: 32, 1>}, {transform_indices = @transform_4, window_bounds = array<i64: 32, 256>}]} {
    %c0 = arith.constant 0 : index
    %c0_0 = arith.constant 0 : index
    %0 = vector.load %arg2[%c0, %c0_0] : memref<32x128xbf16, #tpu.memory_space<vmem>>, vector<32x128xbf16>
    %c0_1 = arith.constant 0 : index
    %c0_2 = arith.constant 0 : index
    %1 = vector.load %arg1[%c0_1, %c0_2] : memref<128x256xbf16, #tpu.memory_space<vmem>>, vector<128x256xbf16>
    %cst = arith.constant dense<0.000000e+00> : vector<32x256xf32>
    %2 = tpu.matmul %0, %1, %cst {dimension_numbers = #tpu.dot_dimension_numbers<[1], [0], [0], [1], [0, 0, 1, 1], [], []>} : vector<32x128xbf16>, vector<128x256xbf16>, vector<32x256xf32> -> vector<32x256xf32>
    %c0_3 = arith.constant 0 : index
    %c0_4 = arith.constant 0 : index
    %3 = vector.load %arg3[%c0_3, %c0_4] : memref<32x1xf32, #tpu.memory_space<vmem>>, vector<32x1xf32>
    %4 = vector.broadcast %3 : vector<32x1xf32> to vector<32x256xf32>
    %5 = arith.addf %2, %4 : vector<32x256xf32>
    %cst_5 = arith.constant 0.000000e+00 : f32
    %6 = vector.broadcast %cst_5 : f32 to vector<32x256xf32>
    %7 = arith.cmpf ogt, %5, %6 : vector<32x256xf32>
    %c0_6 = arith.constant 0 : index
    %c0_7 = arith.constant 0 : index
    %8 = vector.load %arg4[%c0_6, %c0_7] : memref<32x1xf32, #tpu.memory_space<vmem>>, vector<32x1xf32>
    %9 = vector.broadcast %8 : vector<32x1xf32> to vector<32x256xf32>
    %10 = arith.mulf %9, %5 : vector<32x256xf32>
    %11 = arith.select %7, %5, %10 : vector<32x256xi1>, vector<32x256xf32>
    %12 = arith.truncf %11 : vector<32x256xf32> to vector<32x256xbf16>
    %c0_8 = arith.constant 0 : index
    %c0_9 = arith.constant 0 : index
    %13 = vector.load %arg5[%c0_8, %c0_9] : memref<32x256xbf16, #tpu.memory_space<vmem>>, vector<32x256xbf16>
    tpu.vector_store %arg5[%c0_8, %c0_9], %12 {strides = array<i32>} : memref<32x256xbf16, #tpu.memory_space<vmem>>, vector<32x256xbf16>,
    return
  }
  func.func @transform_0(%arg0: i32) -> (i32, i32) {
    %c0_i32 = arith.constant 0 : i32
    %c0_i32_0 = arith.constant 0 : i32
    return %c0_i32, %arg0 : i32, i32
  }
  func.func @transform_1(%arg0: i32) -> (i32, i32) {
    %c0_i32 = arith.constant 0 : i32
    %c0_i32_0 = arith.constant 0 : i32
    %c0_i32_1 = arith.constant 0 : i32
    return %c0_i32, %c0_i32_0 : i32, i32
  }
  func.func @transform_2(%arg0: i32) -> (i32, i32) {
    %c0_i32 = arith.constant 0 : i32
    %c0_i32_0 = arith.constant 0 : i32
    %c0_i32_1 = arith.constant 0 : i32
    return %c0_i32, %c0_i32_0 : i32, i32
  }
  func.func @transform_3(%arg0: i32) -> (i32, i32) {
    %c0_i32 = arith.constant 0 : i32
    %c0_i32_0 = arith.constant 0 : i32
    %c0_i32_1 = arith.constant 0 : i32
    return %c0_i32, %c0_i32_0 : i32, i32
  }
  func.func @transform_4(%arg0: i32) -> (i32, i32) {
    %c0_i32 = arith.constant 0 : i32
    %c0_i32_0 = arith.constant 0 : i32
    return %c0_i32, %arg0 : i32, i32
  }
}

</mosaic_0001>

<bundles_post_ra>
// kernel: cyclegan_forward.9
= control target key start
LH: loop header
LB: loop body
LE: loop exit
PB: predicated region body
PF: predicated region fallthrough
CT: control target
= control target key end

     0   :  { %s1319_s15 = smov 0   ;;  %s1321_s16 = smov 0   ;;  %s1657_s0 = inlined_call_operand.vmem [shape: bf16[128,512], index: 0, kind: input, shape index: {}]   ;;  %s1658_s1 = inlined_call_operand.vmem [shape: bf16[128,128], index: 1, kind: input, shape index: {}]   ;;  %s1659_s2 = inlined_call_operand.vmem [shape: f32[128,1], index: 2, kind: input, shape index: {}]   ;;  %s1660_s3 = inlined_call_operand.vmem [shape: f32[128,1], index: 3, kind: input, shape index: {}]   ;;  %s1661_s4 = inlined_call_operand.vmem [shape: bf16[128,512], index: 4, kind: output, shape index: {}]  }
   0x1   :  { %s1323_s17 = smov 0  }
   0x2 LB: > { %s1121_s18 = sadd.s32 4294967295, %s1291_s17   ;;  %s1336_s19 = sadd.s32 1, %s1291_s17   ;;  %s1291_s17 = sphi %s1323_s17, %s1665_s17   ;;  %s1287_s16 = sphi %s1321_s16, %s1664_s16   ;;  %s1283_s15 = sphi %s1319_s15, %s1663_s15  }
   0x3   : > { %s18_s20 = ssub.s32 %s1291_s17, %s1336_s19  ;;  %s21_s21 = sadd.s32 1, %s1287_s16 }
   0x4   : > { %p19_p0 = scmp.eq.s32.totalorder %s18_s20, 0  ;;  %p28_p1 = scmp.ne.s32.totalorder %s1287_s16, %s1283_s15 }
   0x5   : > { %p29_p2 = scmp.eq.s32.totalorder %s1291_s17, 0  ;;  %p121_p3 = scmp.eq.s32.totalorder %s1121_s18, 1 }
   0x6   : > { %s1347_s22 = scalar_select %p19_p0, %s1287_s16, %s21_s21  }
   0x7   : > { %p30_p4 = por %p29_p2, %p28_p1  ;;  %p1349_p5 = por %p121_p3, %p28_p1 }
   0x8   : > { %p1124_p6 = scmp.ge.s32.totalorder %s1291_s17, 2 }
   0xa   : > { %152 = sbr.rel (%p1124_p6) target bundleno = 29 (0x1d), region = 28 }
  0x11   : > { %155 = sbr.rel (!%p30_p4) target bundleno = 29 (0x1d), region = 32  ;;  %s157_s24 = sand.u32 (%p30_p4), 1, %s1287_s16  }
  0x12   : > { %s1176_s25 = sshll.u32 (%p30_p4), %s1291_s17, 3  ;;  %s1125_s26 = sshll.u32 (%p30_p4), %s157_s24, 7 }
  0x13   : > { %s1359_s29 = scalar_lea.vmem (%p30_p4), %s1657_s0, %s1176_s25  ;;  %s159_s30 = scalar_lea.vmem (%p30_p4), [#allocation2], %s1125_s26 }
  0x14   : > { %v220_v0 = vld [vmem:[%s1359_s29] sm:$0xff] (%p30_p4)  ;;  %v222_v1 = vld [vmem:[%s1359_s29 + $0x10] sm:$0xff] (%p30_p4) }
  0x15   : > { %v224_v2 = vld [vmem:[%s1359_s29 + $0x20] sm:$0xff] (%p30_p4)  ;;  %221 = vst [vmem:[%s159_s30] sm:$0xff] (%p30_p4), %v220_v0  ;;  %223 = vst [vmem:[%s159_s30 + $0x8] sm:$0xff] (%p30_p4), %v222_v1  ;;  %v226_v3 = vld [vmem:[%s1359_s29 + $0x30] sm:$0xff] (%p30_p4) }
  0x16   : > { %225 = vst [vmem:[%s159_s30 + $0x10] sm:$0xff] (%p30_p4), %v224_v2  ;;  %v228_v4 = vld [vmem:[%s1359_s29 + $0x40] sm:$0xff] (%p30_p4)  ;;  %v230_v5 = vld [vmem:[%s1359_s29 + $0x50] sm:$0xff] (%p30_p4)  ;;  %227 = vst [vmem:[%s159_s30 + $0x18] sm:$0xff] (%p30_p4), %v226_v3 }
  0x17   : > { %229 = vst [vmem:[%s159_s30 + $0x20] sm:$0xff] (%p30_p4), %v228_v4  ;;  %231 = vst [vmem:[%s159_s30 + $0x28] sm:$0xff] (%p30_p4), %v230_v5  ;;  %v232_v6 = vld [vmem:[%s1359_s29 + $0x60] sm:$0xff] (%p30_p4)  ;;  %v234_v7 = vld [vmem:[%s1359_s29 + $0x70] sm:$0xff] (%p30_p4) }
  0x18   : > { %v236_v8 = vld [vmem:[%s1359_s29 + $0x80] sm:$0xff]  ;;  %233 = vst [vmem:[%s159_s30 + $0x30] sm:$0xff] %v232_v6  ;;  %235 = vst [vmem:[%s159_s30 + $0x38] sm:$0xff] %v234_v7  ;;  %v238_v9 = vld [vmem:[%s1359_s29 + $0x90] sm:$0xff] }
  0x19   : > { %237 = vst [vmem:[%s159_s30 + $0x40] sm:$0xff] %v236_v8  ;;  %v240_v10 = vld [vmem:[%s1359_s29 + $0xa0] sm:$0xff]  ;;  %v242_v11 = vld [vmem:[%s1359_s29 + $0xb0] sm:$0xff]  ;;  %239 = vst [vmem:[%s159_s30 + $0x48] sm:$0xff] %v238_v9 }
  0x1a   : > { %241 = vst [vmem:[%s159_s30 + $0x50] sm:$0xff] %v240_v10  ;;  %243 = vst [vmem:[%s159_s30 + $0x58] sm:$0xff] %v242_v11  ;;  %v244_v12 = vld [vmem:[%s1359_s29 + $0xc0] sm:$0xff]  ;;  %v246_v13 = vld [vmem:[%s1359_s29 + $0xd0] sm:$0xff] }
  0x1b   : > { %v248_v14 = vld [vmem:[%s1359_s29 + $0xe0] sm:$0xff]  ;;  %245 = vst [vmem:[%s159_s30 + $0x60] sm:$0xff] %v244_v12  ;;  %247 = vst [vmem:[%s159_s30 + $0x68] sm:$0xff] %v246_v13  ;;  %v250_v15 = vld [vmem:[%s1359_s29 + $0xf0] sm:$0xff] }
  0x1c   : > { %249 = vst [vmem:[%s159_s30 + $0x70] sm:$0xff] %v248_v14  ;;  %251 = vst [vmem:[%s159_s30 + $0x78] sm:$0xff] %v250_v15 }
  0x1d PF: > { %p1128_p7 = scmp.ge.s32.totalorder %s1291_s17, 1  ;;  %p256_p8 = scmp.lt.s32.totalorder %s1291_s17, 3 }
  0x1f   : > { %p257_p9 = pnand %p1128_p7, %p256_p8 }
  0x20   : > { %s263_s5 = sand.u32 (!%p257_p9), 1, %s1283_s15   ;;  %v324_v16 = vld [vmem:[%s1659_s2 + $0x10] sm:$0xff] (!%p257_p9)  ;;  %v322_v17 = vld [vmem:[%s1659_s2] sm:$0xff] (!%p257_p9)  ;;  %v1293_v18 = vmov (!%p257_p9), 0   ;;  %v325_v20 = vld [vmem:[%s1659_s2 + $0x18] sm:$0xff] (!%p257_p9) }
  0x21   : > { %260 = sbr.rel (%p257_p9) target bundleno = 330 (0x14a), region = 70  ;;  %s1386_s10 = sshll.u32 (!%p257_p9), %s263_s5, 7  ;;  %1236 = vset.pattern.permute.xlu1 (!%p257_p9), %v1293_v18  ;;  %1235 = vset.pattern.permute.xlu0 (!%p257_p9), %v1293_v18  ;;  %v323_v23 = vld [vmem:[%s1659_s2 + $0x8] sm:$0xff] (!%p257_p9)  ;;  %v326_v30 = vld [vmem:[%s1659_s2 + $0x20] sm:$0xff] (!%p257_p9)  ;;  %v329_v32 = vld [vmem:[%s1659_s2 + $0x38] sm:$0xff] (!%p257_p9) }
  0x22   : > { %350 = vperm.xlu1 (!%p257_p9), %1236, %v324_v16   ;;  %340 = vperm.xlu0 (!%p257_p9), %1235, %v322_v17   ;;  %s1391_s11 = scalar_lea.vmem (!%p257_p9), [#allocation2], %s1386_s10  ;;  %v327_v29 = vld [vmem:[%s1659_s2 + $0x28] sm:$0xff] (!%p257_p9)  ;;  %v328_v33 = vld [vmem:[%s1659_s2 + $0x30] sm:$0xff] (!%p257_p9)  ;;  %v330_v37 = vld [vmem:[%s1659_s2 + $0x40] sm:$0xff] (!%p257_p9)  ;;  %s1568_s13 = scalar_lea.vmem (!%p257_p9), [#allocation3], %s1386_s10 }
  0x23   : > { %v1237_v19 = vld [vmem:[%s1391_s11 + $0x4] ss:$8 sps:$4 sm:$0xff] (!%p257_p9)   ;;  %578 = vmatprep.mubr.bf16.mxu0 (!%p257_p9), %v1293_v18  ;;  %618 = vmatprep.mubr.bf16.mxu1 (!%p257_p9), %v1293_v18  ;;  %v1239_v21 = vld [vmem:[%s1391_s11] ss:$8 sps:$4 sm:$0xff] (!%p257_p9)   ;;  %v1240_v22 = vld [vmem:[%s1391_s11 + $0x14] ss:$8 sps:$4 sm:$0xff] (!%p257_p9)  }
  0x24   : > { %546 = vmatprep.subr.bf16.mxu0 (!%p257_p9), %v1237_v19  ;;  %1194 = vmatprep.subr.bf16.mxu1 (!%p257_p9), %v1237_v19  ;;  %v1242_v24 = vld [vmem:[%s1391_s11 + $0x10] ss:$8 sps:$4 sm:$0xff] (!%p257_p9)   ;;  %v1243_v25 = vld [vmem:[%s1391_s11 + $0x24] ss:$8 sps:$4 sm:$0xff] (!%p257_p9)   ;;  %v1245_v26 = vld [vmem:[%s1391_s11 + $0x20] ss:$8 sps:$4 sm:$0xff] (!%p257_p9)  }
  0x25   : > { %547 = vmatpush1.bf16.msra.mxu0 (!%p257_p9), %v1239_v21  ;;  %1202 = vmatpush1.bf16.msra.mxu1 (!%p257_p9), %v1239_v21  ;;  %v1246_v27 = vld [vmem:[%s1391_s11 + $0x34] ss:$8 sps:$4 sm:$0xff] (!%p257_p9)   ;;  %v1248_v28 = vld [vmem:[%s1391_s11 + $0x30] ss:$8 sps:$4 sm:$0xff] (!%p257_p9)   ;;  %v1249_v31 = vld [vmem:[%s1391_s11 + $0x44] ss:$8 sps:$4 sm:$0xff] (!%p257_p9)  }
  0x26   : > { %548 = vmatprep.subr.bf16.mxu0 (!%p257_p9), %v1240_v22  ;;  %1195 = vmatprep.subr.bf16.mxu1 (!%p257_p9), %v1240_v22  ;;  %v1251_v34 = vld [vmem:[%s1391_s11 + $0x40] ss:$8 sps:$4 sm:$0xff] (!%p257_p9)   ;;  %v1252_v35 = vld [vmem:[%s1391_s11 + $0x54] ss:$8 sps:$4 sm:$0xff] (!%p257_p9)   ;;  %v1254_v38 = vld [vmem:[%s1391_s11 + $0x50] ss:$8 sps:$4 sm:$0xff] (!%p257_p9)  }
  0x27   : > { %355 = vperm.xlu1 (!%p257_p9), %1236, %v325_v20   ;;  %345 = vperm.xlu0 (!%p257_p9), %1235, %v323_v23   ;;  %v331_v36 = vld [vmem:[%s1659_s2 + $0x48] sm:$0xff] (!%p257_p9)  ;;  %v333_v40 = vld [vmem:[%s1659_s2 + $0x58] sm:$0xff] (!%p257_p9)  ;;  %v332_v41 = vld [vmem:[%s1659_s2 + $0x50] sm:$0xff] (!%p257_p9) }
  0x28   : > { %v1255_v39 = vld [vmem:[%s1391_s11 + $0x64] ss:$8 sps:$4 sm:$0xff]   ;;  %v1257_v42 = vld [vmem:[%s1391_s11 + $0x60] ss:$8 sps:$4 sm:$0xff]   ;;  %v1258_v43 = vld [vmem:[%s1391_s11 + $0x74] ss:$8 sps:$4 sm:$0xff]  }
  0x29   : > { %549 = vmatpush1.bf16.msra.mxu0 %v1242_v24  ;;  %1203 = vmatpush1.bf16.msra.mxu1 %v1242_v24  ;;  %v335_v44 = vld [vmem:[%s1659_s2 + $0x68] sm:$0xff]  ;;  %v334_v45 = vld [vmem:[%s1659_s2 + $0x60] sm:$0xff]  ;;  %v1260_v46 = vld [vmem:[%s1391_s11 + $0x70] ss:$8 sps:$4 sm:$0xff]   ;;  %s1193_s10 = sshll.u32 (%p1349_p5), %s1121_s18, 3 }
  0x2a   : > { %550 = vmatprep.subr.bf16.mxu0 %v1243_v25  ;;  %1196 = vmatprep.subr.bf16.mxu1 %v1243_v25  ;;  %v1261_v47 = vld [vmem:[%s1658_s1] sm:$0xff]   ;;  %v337_v49 = vld [vmem:[%s1659_s2 + $0x78] sm:$0xff]  ;;  %v336_v50 = vld [vmem:[%s1659_s2 + $0x70] sm:$0xff]  ;;  %s972_s23 = scalar_lea.vmem (%p1349_p5), %s1661_s4, %s1193_s10 }
  0x2b   : > { %365 = vperm.xlu1 %1236, %v327_v29   ;;  %360 = vperm.xlu0 %1235, %v326_v30   ;;  %v1262_v48 = vld [vmem:[%s1658_s1 + $0x20] sm:$0xff]   ;;  %v692_v51 = vld [vmem:[%s1660_s3 + $0x8] sm:$0xff]  ;;  %v694_v55 = vld [vmem:[%s1660_s3 + $0x18] sm:$0xff] }
  0x2c   : > { %v691_v52 = vld [vmem:[%s1660_s3] sm:$0xff]  ;;  %v1263_v53 = vld [vmem:[%s1658_s1 + $0x8] sm:$0xff]   ;;  %v693_v56 = vld [vmem:[%s1660_s3 + $0x10] sm:$0xff] }
  0x2d   : > { %551 = vmatpush1.bf16.msra.mxu0 %v1245_v26  ;;  %1204 = vmatpush1.bf16.msra.mxu1 %v1245_v26  ;;  %v1264_v54 = vld [vmem:[%s1658_s1 + $0x28] sm:$0xff]   ;;  %v695_v58 = vld [vmem:[%s1660_s3 + $0x20] sm:$0xff]  ;;  %v1265_v59 = vld [vmem:[%s1658_s1 + $0x10] sm:$0xff]  }
  0x2e   : > { %552 = vmatprep.subr.bf16.mxu0 %v1246_v27  ;;  %1197 = vmatprep.subr.bf16.mxu1 %v1246_v27  ;;  %v696_v57 = vld [vmem:[%s1660_s3 + $0x28] sm:$0xff]  ;;  %v1266_v60 = vld [vmem:[%s1658_s1 + $0x30] sm:$0xff]   ;;  %v698_v61 = vld [vmem:[%s1660_s3 + $0x38] sm:$0xff] }
  0x2f   : > { %375 = vperm.xlu1 %1236, %v329_v32   ;;  %370 = vperm.xlu0 %1235, %v328_v33   ;;  %v697_v62 = vld [vmem:[%s1660_s3 + $0x30] sm:$0xff]  ;;  %v700_v63 = vld [vmem:[%s1660_s3 + $0x48] sm:$0xff]  ;;  %v699_v0 = vld [vmem:[%s1660_s3 + $0x40] sm:$0xff] }
  0x30   : > { %v1267_v1 = vld [vmem:[%s1658_s1 + $0x18] sm:$0xff]   ;;  %v701_v4 = vld [vmem:[%s1660_s3 + $0x50] sm:$0xff]  ;;  %v704_v5 = vld [vmem:[%s1660_s3 + $0x68] sm:$0xff] }
  0x31   : > { %553 = vmatpush1.bf16.msra.mxu0 %v1248_v28  ;;  %1205 = vmatpush1.bf16.msra.mxu1 %v1248_v28  ;;  %v1268_v2 = vld [vmem:[%s1658_s1 + $0x38] sm:$0xff]   ;;  %v703_v6 = vld [vmem:[%s1660_s3 + $0x60] sm:$0xff]  ;;  %v705_v8 = vld [vmem:[%s1660_s3 + $0x70] sm:$0xff] }
  0x32   : > { %554 = vmatprep.subr.bf16.mxu0 %v1249_v31  ;;  %1198 = vmatprep.subr.bf16.mxu1 %v1249_v31  ;;  %v702_v3 = vld [vmem:[%s1660_s3 + $0x58] sm:$0xff] }
  0x33   : > { %385 = vperm.xlu1 %1236, %v331_v36   ;;  %380 = vperm.xlu0 %1235, %v330_v37   ;;  %v706_v7 = vld [vmem:[%s1660_s3 + $0x78] sm:$0xff] }
  0x35   : > { %555 = vmatpush1.bf16.msra.mxu0 %v1251_v34  ;;  %1206 = vmatpush1.bf16.msra.mxu1 %v1251_v34 }
  0x36   : > { %556 = vmatprep.subr.bf16.mxu0 %v1252_v35  ;;  %1199 = vmatprep.subr.bf16.mxu1 %v1252_v35 }
  0x37   : > { %395 = vperm.xlu1 %1236, %v333_v40   ;;  %390 = vperm.xlu0 %1235, %v332_v41  }
  0x39   : > { %557 = vmatpush1.bf16.msra.mxu0 %v1254_v38  ;;  %1207 = vmatpush1.bf16.msra.mxu1 %v1254_v38 }
  0x3a   : > { %558 = vmatprep.subr.bf16.mxu0 %v1255_v39  ;;  %1200 = vmatprep.subr.bf16.mxu1 %v1255_v39 }
  0x3b   : > { %405 = vperm.xlu1 %1236, %v335_v44   ;;  %400 = vperm.xlu0 %1235, %v334_v45  }
  0x3d   : > { %559 = vmatpush1.bf16.msra.mxu0 %v1257_v42  ;;  %1208 = vmatpush1.bf16.msra.mxu1 %v1257_v42 }
  0x3e   : > { %560 = vmatprep.subr.bf16.mxu0 %v1258_v43  ;;  %1201 = vmatprep.subr.bf16.mxu1 %v1258_v43 }
  0x3f   : > { %415 = vperm.xlu1 %1236, %v337_v49   ;;  %410 = vperm.xlu0 %1235, %v336_v50  }
  0x41   : > { %561 = vmatpush1.bf16.msra.mxu0 %v1260_v46  ;;  %1209 = vmatpush1.bf16.msra.mxu1 %v1260_v46 }
  0x43   : > { %714 = vperm.xlu1 %1236, %v692_v51   ;;  %709 = vperm.xlu0 %1235, %v691_v52  }
  0x44   : > { %579 = vmatmul.mubr.bf16.vlgmr.msra.gmra.mrb[0].mxu0 %v1261_v47  ;;  %619 = vmatmul.mubr.bf16.vlgmr.msra.gmra.mrb[0].mxu1 %v1262_v48 }
  0x45   : > { %588 = vmatprep.mubr.bf16.mxu0 %v1293_v18  ;;  %628 = vmatprep.mubr.bf16.mxu1 %v1293_v18 }
  0x47   : > { %724 = vperm.xlu1 %1236, %v694_v55   ;;  %719 = vperm.xlu0 %1235, %v693_v56  }
  0x4b   : > { %734 = vperm.xlu1 %1236, %v696_v57   ;;  %729 = vperm.xlu0 %1235, %v695_v58  }
  0x4c   : > { %589 = vmatmul.mubr.bf16.gmra.mrb[4].mxu0 %v1263_v53  ;;  %629 = vmatmul.mubr.bf16.gmra.mrb[4].mxu1 %v1264_v54 }
  0x4d   : > { %598 = vmatprep.mubr.bf16.mxu0 %v1293_v18  ;;  %638 = vmatprep.mubr.bf16.mxu1 %v1293_v18 }
  0x4f   : > { %744 = vperm.xlu1 %1236, %v698_v61   ;;  %739 = vperm.xlu0 %1235, %v697_v62  }
  0x53   : > { %754 = vperm.xlu1 %1236, %v700_v63   ;;  %749 = vperm.xlu0 %1235, %v699_v0  }
  0x54   : > { %599 = vmatmul.mubr.bf16.gmra.mrb[8].mxu0 %v1265_v59  ;;  %639 = vmatmul.mubr.bf16.gmra.mrb[8].mxu1 %v1266_v60 }
  0x55   : > { %608 = vmatprep.mubr.bf16.mxu0 %v1293_v18  ;;  %648 = vmatprep.mubr.bf16.mxu1 %v1293_v18 }
  0x57   : > { %764 = vperm.xlu1 %1236, %v702_v3   ;;  %759 = vperm.xlu0 %1235, %v701_v4  }
  0x5b   : > { %774 = vperm.xlu1 %1236, %v704_v5   ;;  %769 = vperm.xlu0 %1235, %v703_v6  }
  0x5c   : > { %609 = vmatmul.mubr.bf16.gmra.mrb[12].mxu0 %v1267_v1  ;;  %649 = vmatmul.mubr.bf16.gmra.mrb[12].mxu1 %v1268_v2 }
  0x5f   : > { %784 = vperm.xlu1 %1236, %v706_v7   ;;  %779 = vperm.xlu0 %1235, %v705_v8  }
  0xa1   : > { %v341_v9 = vpop.permute.xlu0 %340  ;;  %v1531_v10 = vpop.permute.xlu1 %350 }
  0xa6   : > { %v346_v11 = vpop.permute.xlu0 %345  ;;  %v1533_v12 = vpop.permute.xlu1 %355 }
  0xaa   : > { %v1535_v13 = vpop.permute.xlu0 %360  ;;  %v1537_v14 = vpop.permute.xlu1 %365 }
  0xae   : > { %v1539_v15 = vpop.permute.xlu0 %370  ;;  %v1541_v16 = vpop.permute.xlu1 %375 }
  0xb2   : > { %v381_v17 = vpop.permute.xlu0 %380  ;;  %v386_v18 = vpop.permute.xlu1 %385 }
  0xb6   : > { %v1543_v19 = vpop.permute.xlu0 %390  ;;  %v1545_v20 = vpop.permute.xlu1 %395 }
  0xba   : > { %v1547_v21 = vpop.permute.xlu0 %400  ;;  %v1549_v22 = vpop.permute.xlu1 %405 }
  0xbe   : > { %v1551_v23 = vpop.permute.xlu0 %410  ;;  %v1553_v24 = vpop.permute.xlu1 %415 }
  0xc2   : > { %v710_v25 = vpop.permute.xlu0 %709  ;;  %v715_v26 = vpop.permute.xlu1 %714 }
  0xc6   : > { %v1555_v27 = vpop.permute.xlu0 %719  ;;  %v1557_v28 = vpop.permute.xlu1 %724 }
  0xca   : > { %v1559_v29 = vpop.permute.xlu0 %729  ;;  %v1561_v30 = vpop.permute.xlu1 %734 }
  0xce   : > { %v1563_v31 = vpop.permute.xlu0 %739  ;;  %v1565_v32 = vpop.permute.xlu1 %744 }
  0xd2   : > { %v750_v33 = vpop.permute.xlu0 %749  ;;  %v755_v58 = vpop.permute.xlu1 %754 }
  0xd6   : > { %v760_v59 = vpop.permute.xlu0 %759 }
 0x117   : > { %v580_v34 = vpop.f32.mrb[0].mxu0  ;;  %v620_v35 = vpop.f32.mrb[0].mxu1 }
 0x118   : > { %v581_v36 = vadd.f32 %v580_v34, %v341_v9  ;;  %v621_v37 = vadd.f32 %v620_v35, %v381_v17  ;;  %v582_v38 = vpop.f32.mrb[1].mxu0  ;;  %v622_v39 = vpop.f32.mrb[1].mxu1 }
 0x119   : > { %v583_v40 = vadd.f32 %v582_v38, %v341_v9  ;;  %v623_v41 = vadd.f32 %v622_v39, %v381_v17  ;;  %v584_v42 = vpop.f32.mrb[2].mxu0  ;;  %v624_v43 = vpop.f32.mrb[2].mxu1 }
 0x11a   : > { %vm659_vm0 = vcmp.gt.f32.partialorder %v581_v36, 0.0  ;;  %v787_v44 = vmul.f32 %v710_v25, %v581_v36  ;;  %vm675_vm1 = vcmp.gt.f32.partialorder %v621_v37, 0.0  ;;  %v803_v45 = vmul.f32 %v750_v33, %v621_v37  ;;  %v586_v46 = vpop.f32.mrb[3].mxu0  ;;  %v626_v47 = vpop.f32.mrb[3].mxu1 }
 0x11b   : > { %vm660_vm2 = vcmp.gt.f32.partialorder %v583_v40, 0.0  ;;  %v788_v48 = vmul.f32 %v710_v25, %v583_v40  ;;  %vm676_vm3 = vcmp.gt.f32.partialorder %v623_v41, 0.0  ;;  %v804_v49 = vmul.f32 %v750_v33, %v623_v41 }
 0x11c   : > { %v819_v50 = vsel %vm659_vm0, %v581_v36, %v787_v44  ;;  %v835_v51 = vsel %vm675_vm1, %v621_v37, %v803_v45  ;;  %v585_v52 = vadd.f32 %v584_v42, %v346_v11  ;;  %v625_v53 = vadd.f32 %v624_v43, %v386_v18 }
 0x11d   : > { %v820_v54 = vsel %vm660_vm2, %v583_v40, %v788_v48  ;;  %v836_v55 = vsel %vm676_vm3, %v623_v41, %v804_v49  ;;  %v587_v56 = vadd.f32 %v586_v46, %v346_v11  ;;  %v627_v57 = vadd.f32 %v626_v47, %v386_v18  ;;  %v765_v46 = vpop.permute.xlu1 %764 }
 0x11e   : > { %v1177_v60 = vpack.c.bf16 %v820_v54, %v819_v50  ;;  %v1185_v61 = vpack.c.bf16 %v836_v55, %v835_v51  ;;  %vm661_vm4 = vcmp.gt.f32.partialorder %v585_v52, 0.0  ;;  %v789_v62 = vmul.f32 %v715_v26, %v585_v52 }
 0x11f   : > { %vm677_vm5 = vcmp.gt.f32.partialorder %v625_v53, 0.0  ;;  %v805_v63 = vmul.f32 %v755_v58, %v625_v53  ;;  %vm662_vm6 = vcmp.gt.f32.partialorder %v587_v56, 0.0  ;;  %v790_v0 = vmul.f32 %v715_v26, %v587_v56  ;;  %v590_v1 = vpop.f32.mrb[4].mxu0  ;;  %v630_v2 = vpop.f32.mrb[4].mxu1 }
 0x120   : > { %947 = vst [vmem:[%s1568_s13] sm:$0xff] %v1177_v60  ;;  %955 = vst [vmem:[%s1568_s13 + $0x40] sm:$0xff] %v1185_v61  ;;  %v821_v3 = vsel %vm661_vm4, %v585_v52, %v789_v62  ;;  %vm678_vm7 = vcmp.gt.f32.partialorder %v627_v57, 0.0  ;;  %v806_v4 = vmul.f32 %v755_v58, %v627_v57  ;;  %v591_v5 = vadd.f32 %v590_v1, %v1531_v10  ;;  %v592_v6 = vpop.f32.mrb[5].mxu0  ;;  %v632_v7 = vpop.f32.mrb[5].mxu1 }
 0x121   : > { %v837_v8 = vsel %vm677_vm5, %v625_v53, %v805_v63  ;;  %v822_v9 = vsel %vm662_vm6, %v587_v56, %v790_v0  ;;  %v631_v11 = vadd.f32 %v630_v2, %v1543_v19  ;;  %v593_v17 = vadd.f32 %v592_v6, %v1531_v10  ;;  %v594_v18 = vpop.f32.mrb[6].mxu0  ;;  %v634_v25 = vpop.f32.mrb[6].mxu1 }
 0x122   : > { %v1178_v26 = vpack.c.bf16 %v822_v9, %v821_v3  ;;  %v838_v33 = vsel %vm678_vm7, %v627_v57, %v806_v4  ;;  %vm663_vm8 = vcmp.gt.f32.partialorder %v591_v5, 0.0  ;;  %v791_v34 = vmul.f32 %v1555_v27, %v591_v5  ;;  %v596_v35 = vpop.f32.mrb[7].mxu0  ;;  %v636_v36 = vpop.f32.mrb[7].mxu1 }
 0x123   : > { %v1186_v37 = vpack.c.bf16 %v838_v33, %v837_v8  ;;  %vm679_vm9 = vcmp.gt.f32.partialorder %v631_v11, 0.0  ;;  %v807_v38 = vmul.f32 %v760_v59, %v631_v11  ;;  %vm664_vm10 = vcmp.gt.f32.partialorder %v593_v17, 0.0  ;;  %v775_v9 = vpop.permute.xlu1 %774 }
 0x124   : > { %948 = vst [vmem:[%s1568_s13 + $0x8] sm:$0xff] %v1178_v26  ;;  %v823_v39 = vsel %vm663_vm8, %v591_v5, %v791_v34  ;;  %v792_v40 = vmul.f32 %v1555_v27, %v593_v17  ;;  %v633_v10 = vadd.f32 %v632_v7, %v1543_v19  ;;  %v595_v41 = vadd.f32 %v594_v18, %v1533_v12  ;;  %v770_v5 = vpop.permute.xlu0 %769 }
 0x125   : > { %956 = vst [vmem:[%s1568_s13 + $0x48] sm:$0xff] %v1186_v37  ;;  %v839_v42 = vsel %vm679_vm9, %v631_v11, %v807_v38  ;;  %v635_v43 = vadd.f32 %v634_v25, %v1545_v20  ;;  %v597_v44 = vadd.f32 %v596_v35, %v1533_v12  ;;  %v637_v45 = vadd.f32 %v636_v36, %v1545_v20 }
 0x126   : > { %v824_v47 = vsel %vm664_vm10, %v593_v17, %v792_v40  ;;  %vm680_vm11 = vcmp.gt.f32.partialorder %v633_v10, 0.0  ;;  %v808_v48 = vmul.f32 %v760_v59, %v633_v10  ;;  %vm665_vm12 = vcmp.gt.f32.partialorder %v595_v41, 0.0 }
 0x127   : > { %v1179_v49 = vpack.c.bf16 %v824_v47, %v823_v39  ;;  %v793_v27 = vmul.f32 %v1557_v28, %v595_v41  ;;  %vm681_vm13 = vcmp.gt.f32.partialorder %v635_v43, 0.0  ;;  %v809_v19 = vmul.f32 %v765_v46, %v635_v43  ;;  %v600_v50 = vpop.f32.mrb[8].mxu0  ;;  %v640_v51 = vpop.f32.mrb[8].mxu1 }
 0x128   : > { %v840_v52 = vsel %vm680_vm11, %v633_v10, %v808_v48  ;;  %vm666_vm14 = vcmp.gt.f32.partialorder %v597_v44, 0.0  ;;  %v794_v53 = vmul.f32 %v1557_v28, %v597_v44  ;;  %vm682_vm15 = vcmp.gt.f32.partialorder %v637_v45, 0.0  ;;  %v602_v12 = vpop.f32.mrb[9].mxu0  ;;  %v642_v20 = vpop.f32.mrb[9].mxu1 }
 0x129   : > { %949 = vst [vmem:[%s1568_s13 + $0x10] sm:$0xff] %v1179_v49  ;;  %v1187_v54 = vpack.c.bf16 %v840_v52, %v839_v42  ;;  %v825_v55 = vsel %vm665_vm12, %v595_v41, %v793_v27  ;;  %v841_v56 = vsel %vm681_vm13, %v635_v43, %v809_v19  ;;  %v810_v57 = vmul.f32 %v765_v46, %v637_v45  ;;  %v604_v58 = vpop.f32.mrb[10].mxu0  ;;  %v644_v59 = vpop.f32.mrb[10].mxu1 }
 0x12a   : > { %v826_v60 = vsel %vm666_vm14, %v597_v44, %v794_v53  ;;  %v601_v61 = vadd.f32 %v600_v50, %v1535_v13  ;;  %v641_v62 = vadd.f32 %v640_v51, %v1547_v21  ;;  %v603_v63 = vadd.f32 %v602_v12, %v1535_v13  ;;  %v606_v28 = vpop.f32.mrb[11].mxu0  ;;  %v646_v0 = vpop.f32.mrb[11].mxu1 }
 0x12b   : > { %957 = vst [vmem:[%s1568_s13 + $0x50] sm:$0xff] %v1187_v54  ;;  %v1180_v1 = vpack.c.bf16 %v826_v60, %v825_v55  ;;  %v842_v2 = vsel %vm682_vm15, %v637_v45, %v810_v57  ;;  %v643_v3 = vadd.f32 %v642_v20, %v1547_v21  ;;  %v605_v4 = vadd.f32 %v604_v58, %v1537_v14  ;;  %v780_v19 = vpop.permute.xlu0 %779  ;;  %v785_v60 = vpop.permute.xlu1 %784 }
 0x12c   : > { %v1188_v6 = vpack.c.bf16 %v842_v2, %v841_v56  ;;  %vm667_vm0 = vcmp.gt.f32.partialorder %v601_v61, 0.0  ;;  %v795_v7 = vmul.f32 %v1559_v29, %v601_v61  ;;  %vm683_vm1 = vcmp.gt.f32.partialorder %v641_v62, 0.0 }
 0x12d   : > { %950 = vst [vmem:[%s1568_s13 + $0x18] sm:$0xff] %v1180_v1  ;;  %v811_v8 = vmul.f32 %v770_v5, %v641_v62  ;;  %vm668_vm2 = vcmp.gt.f32.partialorder %v603_v63, 0.0  ;;  %v796_v13 = vmul.f32 %v1559_v29, %v603_v63  ;;  %vm684_vm3 = vcmp.gt.f32.partialorder %v643_v3, 0.0 }
 0x12e   : > { %958 = vst [vmem:[%s1568_s13 + $0x58] sm:$0xff] %v1188_v6  ;;  %v827_v11 = vsel %vm667_vm0, %v601_v61, %v795_v7  ;;  %v812_v17 = vmul.f32 %v770_v5, %v643_v3  ;;  %vm669_vm4 = vcmp.gt.f32.partialorder %v605_v4, 0.0  ;;  %v797_v21 = vmul.f32 %v1561_v30, %v605_v4  ;;  %v1032_v6 = vld [vmem:[%s1568_s13 + $0x8] sm:$0xff] (%p1349_p5) }
 0x12f   : > { %v843_v18 = vsel %vm683_vm1, %v641_v62, %v811_v8  ;;  %v828_v25 = vsel %vm668_vm2, %v603_v63, %v796_v13  ;;  %v645_v26 = vadd.f32 %v644_v59, %v1549_v22  ;;  %v607_v33 = vadd.f32 %v606_v28, %v1537_v14  ;;  %v610_v34 = vpop.f32.mrb[12].mxu0  ;;  %v650_v35 = vpop.f32.mrb[12].mxu1  ;;  %1033 = vst [vmem:[%s972_s23 + $0x10] sm:$0xff] (%p1349_p5), %v1032_v6 }
 0x130   : > { %v1181_v36 = vpack.c.bf16 %v828_v25, %v827_v11  ;;  %v844_v37 = vsel %vm684_vm3, %v643_v3, %v812_v17  ;;  %v829_v29 = vsel %vm669_vm4, %v605_v4, %v797_v21  ;;  %v647_v38 = vadd.f32 %v646_v0, %v1549_v22  ;;  %v612_v39 = vpop.f32.mrb[13].mxu0  ;;  %v652_v40 = vpop.f32.mrb[13].mxu1  ;;  %v1034_v7 = vld [vmem:[%s1568_s13 + $0x10] sm:$0xff] (%p1349_p5)  ;;  %v1046_v21 = vld [vmem:[%s1568_s13 + $0x40] sm:$0xff] (%p1349_p5) }
 0x131   : > { %v1189_v10 = vpack.c.bf16 %v844_v37, %v843_v18  ;;  %vm685_vm5 = vcmp.gt.f32.partialorder %v645_v26, 0.0  ;;  %v813_v41 = vmul.f32 %v775_v9, %v645_v26  ;;  %vm670_vm6 = vcmp.gt.f32.partialorder %v607_v33, 0.0  ;;  %v614_v42 = vpop.f32.mrb[14].mxu0  ;;  %v654_v43 = vpop.f32.mrb[14].mxu1  ;;  %1035 = vst [vmem:[%s972_s23 + $0x20] sm:$0xff] (%p1349_p5), %v1034_v7  ;;  %1047 = vst [vmem:[%s972_s23 + $0x80] sm:$0xff] (%p1349_p5), %v1046_v21 }
 0x132   : > { %951 = vst [vmem:[%s1568_s13 + $0x20] sm:$0xff] %v1181_v36  ;;  %v798_v44 = vmul.f32 %v1561_v30, %v607_v33  ;;  %vm686_vm7 = vcmp.gt.f32.partialorder %v647_v38, 0.0  ;;  %v814_v14 = vmul.f32 %v775_v9, %v647_v38  ;;  %v611_v45 = vadd.f32 %v610_v34, %v1539_v15  ;;  %v616_v46 = vpop.f32.mrb[15].mxu0  ;;  %v656_v47 = vpop.f32.mrb[15].mxu1  ;;  %v1048_v18 = vld [vmem:[%s1568_s13 + $0x48] sm:$0xff] (%p1349_p5)  ;;  %v1050_v25 = vld [vmem:[%s1568_s13 + $0x50] sm:$0xff] (%p1349_p5) }
 0x133   : > { %959 = vst [vmem:[%s1568_s13 + $0x60] sm:$0xff] %v1189_v10  ;;  %v845_v22 = vsel %vm685_vm5, %v645_v26, %v813_v41  ;;  %v651_v48 = vadd.f32 %v650_v35, %v1551_v23  ;;  %v613_v49 = vadd.f32 %v612_v39, %v1539_v15  ;;  %v653_v27 = vadd.f32 %v652_v40, %v1551_v23 }
 0x134   : > { %v830_v50 = vsel %vm670_vm6, %v607_v33, %v798_v44  ;;  %v846_v30 = vsel %vm686_vm7, %v647_v38, %v814_v14  ;;  %vm671_vm8 = vcmp.gt.f32.partialorder %v611_v45, 0.0  ;;  %v799_v51 = vmul.f32 %v1563_v31, %v611_v45  ;;  %v1036_v8 = vld [vmem:[%s1568_s13 + $0x18] sm:$0xff] (%p1349_p5)  ;;  %1049 = vst [vmem:[%s972_s23 + $0x90] sm:$0xff] (%p1349_p5), %v1048_v18  ;;  %1051 = vst [vmem:[%s972_s23 + $0xa0] sm:$0xff] (%p1349_p5), %v1050_v25 }
 0x135   : > { %v1182_v52 = vpack.c.bf16 %v830_v50, %v829_v29  ;;  %v1190_v53 = vpack.c.bf16 %v846_v30, %v845_v22  ;;  %vm687_vm9 = vcmp.gt.f32.partialorder %v651_v48, 0.0  ;;  %v815_v12 = vmul.f32 %v780_v19, %v651_v48  ;;  %1037 = vst [vmem:[%s972_s23 + $0x30] sm:$0xff] (%p1349_p5), %v1036_v8  ;;  %v1052_v26 = vld [vmem:[%s1568_s13 + $0x58] sm:$0xff] (%p1349_p5) }
 0x136   : > { %v831_v20 = vsel %vm671_vm8, %v611_v45, %v799_v51  ;;  %vm672_vm10 = vcmp.gt.f32.partialorder %v613_v49, 0.0  ;;  %v800_v54 = vmul.f32 %v1563_v31, %v613_v49  ;;  %vm688_vm11 = vcmp.gt.f32.partialorder %v653_v27, 0.0  ;;  %1053 = vst [vmem:[%s972_s23 + $0xb0] sm:$0xff] (%p1349_p5), %v1052_v26 }
 0x137   : > { %952 = vst [vmem:[%s1568_s13 + $0x28] sm:$0xff] %v1182_v52  ;;  %960 = vst [vmem:[%s1568_s13 + $0x68] sm:$0xff] %v1190_v53  ;;  %v847_v15 = vsel %vm687_vm9, %v651_v48, %v815_v12  ;;  %v816_v23 = vmul.f32 %v780_v19, %v653_v27  ;;  %v615_v55 = vadd.f32 %v614_v42, %v1541_v16 }
 0x138   : > { %v655_v56 = vadd.f32 %v654_v43, %v1553_v24  ;;  %v832_v57 = vsel %vm672_vm10, %v613_v49, %v800_v54  ;;  %v617_v58 = vadd.f32 %v616_v46, %v1541_v16  ;;  %v657_v59 = vadd.f32 %v656_v47, %v1553_v24 }
 0x139   : > { %v1183_v61 = vpack.c.bf16 %v832_v57, %v831_v20  ;;  %v848_v62 = vsel %vm688_vm11, %v653_v27, %v816_v23  ;;  %vm673_vm12 = vcmp.gt.f32.partialorder %v615_v55, 0.0  ;;  %v801_v31 = vmul.f32 %v1565_v32, %v615_v55  ;;  %v1038_v13 = vld [vmem:[%s1568_s13 + $0x20] sm:$0xff] (%p1349_p5) }
 0x13a   : > { %v1191_v63 = vpack.c.bf16 %v848_v62, %v847_v15  ;;  %vm689_vm13 = vcmp.gt.f32.partialorder %v655_v56, 0.0  ;;  %v817_v28 = vmul.f32 %v785_v60, %v655_v56  ;;  %vm674_vm14 = vcmp.gt.f32.partialorder %v617_v58, 0.0  ;;  %969 = sbr.rel (!%p1349_p5) target bundleno = 330 (0x14a), region = 78  ;;  %1039 = vst [vmem:[%s972_s23 + $0x40] sm:$0xff] (%p1349_p5), %v1038_v13  ;;  %v1054_v33 = vld [vmem:[%s1568_s13 + $0x60] sm:$0xff] (%p1349_p5) }
 0x13b   : > { %953 = vst [vmem:[%s1568_s13 + $0x30] sm:$0xff] %v1183_v61  ;;  %v833_v0 = vsel %vm673_vm12, %v615_v55, %v801_v31  ;;  %v802_v1 = vmul.f32 %v1565_v32, %v617_v58  ;;  %vm690_vm15 = vcmp.gt.f32.partialorder %v657_v59, 0.0  ;;  %v818_v16 = vmul.f32 %v785_v60, %v657_v59  ;;  %v1030_v32 = vld [vmem:[%s1568_s13] sm:$0xff] (%p1349_p5)  ;;  %1055 = vst [vmem:[%s972_s23 + $0xc0] sm:$0xff] (%p1349_p5), %v1054_v33 }
 0x13c   : > { %961 = vst [vmem:[%s1568_s13 + $0x70] sm:$0xff] %v1191_v63  ;;  %v849_v24 = vsel %vm689_vm13, %v655_v56, %v817_v28  ;;  %1031 = vst [vmem:[%s972_s23] sm:$0xff] (%p1349_p5), %v1030_v32 }
 0x13d   : > { %v834_v2 = vsel %vm674_vm14, %v617_v58, %v802_v1  ;;  %v850_v3 = vsel %vm690_vm15, %v657_v59, %v818_v16 }
 0x13e   : > { %v1184_v4 = vpack.c.bf16 %v834_v2, %v833_v0  ;;  %v1192_v5 = vpack.c.bf16 %v850_v3, %v849_v24  ;;  %v1040_v9 = vld [vmem:[%s1568_s13 + $0x28] sm:$0xff] (%p1349_p5) }
 0x13f   : > { %1041 = vst [vmem:[%s972_s23 + $0x50] sm:$0xff] (%p1349_p5), %v1040_v9  ;;  %v1056_v34 = vld [vmem:[%s1568_s13 + $0x68] sm:$0xff] (%p1349_p5) }
 0x140   : > { %954 = vst [vmem:[%s1568_s13 + $0x38] sm:$0xff] %v1184_v4  ;;  %962 = vst [vmem:[%s1568_s13 + $0x78] sm:$0xff] %v1192_v5 }
 0x141   : > { %1057 = vst [vmem:[%s972_s23 + $0xd0] sm:$0xff] %v1056_v34 }
 0x142   : > { %v1042_v11 = vld [vmem:[%s1568_s13 + $0x30] sm:$0xff] }
 0x143   : > { %1043 = vst [vmem:[%s972_s23 + $0x60] sm:$0xff] %v1042_v11  ;;  %v1058_v35 = vld [vmem:[%s1568_s13 + $0x70] sm:$0xff] }
 0x144   : > { %1059 = vst [vmem:[%s972_s23 + $0xe0] sm:$0xff] %v1058_v35 }
 0x147   : > { %v1044_v17 = vld [vmem:[%s1568_s13 + $0x38] sm:$0xff] }
 0x148   : > { %1045 = vst [vmem:[%s972_s23 + $0x70] sm:$0xff] %v1044_v17  ;;  %v1060_v36 = vld [vmem:[%s1568_s13 + $0x78] sm:$0xff] }
 0x149   : > { %1061 = vst [vmem:[%s972_s23 + $0xf0] sm:$0xff] %v1060_v36 }
 0x14a PF: > { %p11_p10 = scmp.ge.s32.totalorder %s1336_s19, 4   ;;  %s1663_s15 = smov %s1287_s16 }
 0x14b   : > { %s1664_s16 = smov %s1347_s22  ;;  %s1665_s17 = smov %s1336_s19 }
 0x14c   :  { %13 = sbr.rel (!%p11_p10) target bundleno = 2 (0x2), region = 147 }

// kernel: cyclegan_forward.16
= control target key start
LH: loop header
LB: loop body
LE: loop exit
PB: predicated region body
PF: predicated region fallthrough
CT: control target
= control target key end

     0   :  { %s1097_s15 = smov 0   ;;  %s1099_s16 = smov 0   ;;  %s1314_s0 = inlined_call_operand.vmem [shape: bf16[384,512], index: 0, kind: input, shape index: {}]   ;;  %s1315_s1 = inlined_call_operand.vmem [shape: bf16[8,384], index: 1, kind: input, shape index: {}]   ;;  %s1316_s2 = inlined_call_operand.vmem [shape: f32[8,1], index: 2, kind: input, shape index: {}]   ;;  %s1317_s3 = inlined_call_operand.vmem [shape: f32[8,1], index: 3, kind: input, shape index: {}]   ;;  %s1318_s4 = inlined_call_operand.vmem [shape: f32[8,512], index: 4, kind: output, shape index: {}]  }
   0x1   :  { %s1101_s17 = smov 0  }
   0x2 LB: > { %s877_s3 = sadd.s32 4294967295, %s1069_s17   ;;  %s1114_s18 = sadd.s32 1, %s1069_s17   ;;  %s1069_s17 = sphi %s1101_s17, %s1321_s17   ;;  %s1065_s16 = sphi %s1099_s16, %s1320_s16   ;;  %s1061_s15 = sphi %s1097_s15, %s1319_s15  }
   0x3   : > { %s18_s19 = ssub.s32 %s1069_s17, %s1114_s18  ;;  %s21_s20 = sadd.s32 1, %s1065_s16 }
   0x4   : > { %p19_p0 = scmp.eq.s32.totalorder %s18_s19, 0  ;;  %p28_p1 = scmp.ne.s32.totalorder %s1065_s16, %s1061_s15 }
   0x5   : > { %p29_p2 = scmp.eq.s32.totalorder %s1069_s17, 0  ;;  %p880_p4 = scmp.ge.s32.totalorder %s1069_s17, 2 }
   0x6   : > { %s1123_s21 = scalar_select %p19_p0, %s1065_s16, %s21_s20  }
   0x7   : > { %p30_p3 = por %p29_p2, %p28_p1  ;;  %152 = sbr.rel (%p880_p4) target bundleno = 42 (0x2a), region = 28 }
   0xe   : > { %155 = sbr.rel (!%p30_p3) target bundleno = 42 (0x2a), region = 32  ;;  %s157_s22 = sand.u32 (%p30_p3), 1, %s1065_s16  }
   0xf   : > { %s939_s23 = sshll.u32 (%p30_p3), %s1069_s17, 3  ;;  %s944_s24 = smul.u32 (%p30_p3), 384, %s157_s22 }
  0x10   : > { %s1131_s27 = scalar_lea.vmem (%p30_p3), %s1314_s0, %s939_s23 }
  0x11   : > { %v284_v0 = vld [vmem:[%s1131_s27] sm:$0xff] (%p30_p3)  ;;  %v286_v1 = vld [vmem:[%s1131_s27 + $0x10] sm:$0xff] (%p30_p3)  ;;  %s1139_s28 = scalar_lea.vmem (%p30_p3), [#allocation2], %s944_s24 }
  0x12   : > { %v288_v2 = vld [vmem:[%s1131_s27 + $0x20] sm:$0xff] (%p30_p3)  ;;  %v290_v3 = vld [vmem:[%s1131_s27 + $0x30] sm:$0xff] (%p30_p3)  ;;  %285 = vst [vmem:[%s1139_s28] sm:$0xff] (%p30_p3), %v284_v0  ;;  %287 = vst [vmem:[%s1139_s28 + $0x8] sm:$0xff] (%p30_p3), %v286_v1 }
  0x13   : > { %v292_v4 = vld [vmem:[%s1131_s27 + $0x40] sm:$0xff] (%p30_p3)  ;;  %v294_v5 = vld [vmem:[%s1131_s27 + $0x50] sm:$0xff] (%p30_p3)  ;;  %289 = vst [vmem:[%s1139_s28 + $0x10] sm:$0xff] (%p30_p3), %v288_v2  ;;  %291 = vst [vmem:[%s1139_s28 + $0x18] sm:$0xff] (%p30_p3), %v290_v3 }
  0x14   : > { %293 = vst [vmem:[%s1139_s28 + $0x20] sm:$0xff] (%p30_p3), %v292_v4  ;;  %295 = vst [vmem:[%s1139_s28 + $0x28] sm:$0xff] (%p30_p3), %v294_v5  ;;  %v296_v6 = vld [vmem:[%s1131_s27 + $0x60] sm:$0xff] (%p30_p3)  ;;  %v298_v7 = vld [vmem:[%s1131_s27 + $0x70] sm:$0xff] (%p30_p3) }
  0x15   : > { %v300_v8 = vld [vmem:[%s1131_s27 + $0x80] sm:$0xff]  ;;  %297 = vst [vmem:[%s1139_s28 + $0x30] sm:$0xff] %v296_v6  ;;  %299 = vst [vmem:[%s1139_s28 + $0x38] sm:$0xff] %v298_v7  ;;  %v302_v9 = vld [vmem:[%s1131_s27 + $0x90] sm:$0xff] }
  0x16   : > { %301 = vst [vmem:[%s1139_s28 + $0x40] sm:$0xff] %v300_v8  ;;  %v304_v10 = vld [vmem:[%s1131_s27 + $0xa0] sm:$0xff]  ;;  %v306_v11 = vld [vmem:[%s1131_s27 + $0xb0] sm:$0xff]  ;;  %303 = vst [vmem:[%s1139_s28 + $0x48] sm:$0xff] %v302_v9 }
  0x17   : > { %305 = vst [vmem:[%s1139_s28 + $0x50] sm:$0xff] %v304_v10  ;;  %307 = vst [vmem:[%s1139_s28 + $0x58] sm:$0xff] %v306_v11  ;;  %v308_v12 = vld [vmem:[%s1131_s27 + $0xc0] sm:$0xff]  ;;  %v310_v13 = vld [vmem:[%s1131_s27 + $0xd0] sm:$0xff] }
  0x18   : > { %v312_v14 = vld [vmem:[%s1131_s27 + $0xe0] sm:$0xff]  ;;  %309 = vst [vmem:[%s1139_s28 + $0x60] sm:$0xff] %v308_v12  ;;  %311 = vst [vmem:[%s1139_s28 + $0x68] sm:$0xff] %v310_v13  ;;  %v314_v15 = vld [vmem:[%s1131_s27 + $0xf0] sm:$0xff] }
  0x19   : > { %313 = vst [vmem:[%s1139_s28 + $0x70] sm:$0xff] %v312_v14  ;;  %v316_v16 = vld [vmem:[%s1131_s27 + $0x100] sm:$0xff]  ;;  %v318_v17 = vld [vmem:[%s1131_s27 + $0x110] sm:$0xff]  ;;  %315 = vst [vmem:[%s1139_s28 + $0x78] sm:$0xff] %v314_v15 }
  0x1a   : > { %317 = vst [vmem:[%s1139_s28 + $0x80] sm:$0xff] %v316_v16  ;;  %319 = vst [vmem:[%s1139_s28 + $0x88] sm:$0xff] %v318_v17  ;;  %v320_v18 = vld [vmem:[%s1131_s27 + $0x120] sm:$0xff]  ;;  %v322_v19 = vld [vmem:[%s1131_s27 + $0x130] sm:$0xff] }
  0x1b   : > { %v324_v20 = vld [vmem:[%s1131_s27 + $0x140] sm:$0xff]  ;;  %321 = vst [vmem:[%s1139_s28 + $0x90] sm:$0xff] %v320_v18  ;;  %323 = vst [vmem:[%s1139_s28 + $0x98] sm:$0xff] %v322_v19  ;;  %v326_v21 = vld [vmem:[%s1131_s27 + $0x150] sm:$0xff] }
  0x1c   : > { %325 = vst [vmem:[%s1139_s28 + $0xa0] sm:$0xff] %v324_v20  ;;  %v328_v22 = vld [vmem:[%s1131_s27 + $0x160] sm:$0xff]  ;;  %v330_v23 = vld [vmem:[%s1131_s27 + $0x170] sm:$0xff]  ;;  %327 = vst [vmem:[%s1139_s28 + $0xa8] sm:$0xff] %v326_v21 }
  0x1d   : > { %329 = vst [vmem:[%s1139_s28 + $0xb0] sm:$0xff] %v328_v22  ;;  %331 = vst [vmem:[%s1139_s28 + $0xb8] sm:$0xff] %v330_v23  ;;  %v332_v24 = vld [vmem:[%s1131_s27 + $0x180] sm:$0xff]  ;;  %v334_v25 = vld [vmem:[%s1131_s27 + $0x190] sm:$0xff] }
  0x1e   : > { %v336_v26 = vld [vmem:[%s1131_s27 + $0x1a0] sm:$0xff]  ;;  %333 = vst [vmem:[%s1139_s28 + $0xc0] sm:$0xff] %v332_v24  ;;  %335 = vst [vmem:[%s1139_s28 + $0xc8] sm:$0xff] %v334_v25  ;;  %v338_v27 = vld [vmem:[%s1131_s27 + $0x1b0] sm:$0xff] }
  0x1f   : > { %337 = vst [vmem:[%s1139_s28 + $0xd0] sm:$0xff] %v336_v26  ;;  %v340_v28 = vld [vmem:[%s1131_s27 + $0x1c0] sm:$0xff]  ;;  %v342_v29 = vld [vmem:[%s1131_s27 + $0x1d0] sm:$0xff]  ;;  %339 = vst [vmem:[%s1139_s28 + $0xd8] sm:$0xff] %v338_v27 }
  0x20   : > { %341 = vst [vmem:[%s1139_s28 + $0xe0] sm:$0xff] %v340_v28  ;;  %343 = vst [vmem:[%s1139_s28 + $0xe8] sm:$0xff] %v342_v29  ;;  %v344_v30 = vld [vmem:[%s1131_s27 + $0x1e0] sm:$0xff]  ;;  %v346_v31 = vld [vmem:[%s1131_s27 + $0x1f0] sm:$0xff] }
  0x21   : > { %v348_v32 = vld [vmem:[%s1131_s27 + $0x200] sm:$0xff]  ;;  %345 = vst [vmem:[%s1139_s28 + $0xf0] sm:$0xff] %v344_v30  ;;  %347 = vst [vmem:[%s1139_s28 + $0xf8] sm:$0xff] %v346_v31  ;;  %v350_v33 = vld [vmem:[%s1131_s27 + $0x210] sm:$0xff] }
  0x22   : > { %349 = vst [vmem:[%s1139_s28 + $0x100] sm:$0xff] %v348_v32  ;;  %v352_v34 = vld [vmem:[%s1131_s27 + $0x220] sm:$0xff]  ;;  %v354_v35 = vld [vmem:[%s1131_s27 + $0x230] sm:$0xff]  ;;  %351 = vst [vmem:[%s1139_s28 + $0x108] sm:$0xff] %v350_v33 }
  0x23   : > { %353 = vst [vmem:[%s1139_s28 + $0x110] sm:$0xff] %v352_v34  ;;  %355 = vst [vmem:[%s1139_s28 + $0x118] sm:$0xff] %v354_v35  ;;  %v356_v36 = vld [vmem:[%s1131_s27 + $0x240] sm:$0xff]  ;;  %v358_v37 = vld [vmem:[%s1131_s27 + $0x250] sm:$0xff] }
  0x24   : > { %v360_v38 = vld [vmem:[%s1131_s27 + $0x260] sm:$0xff]  ;;  %357 = vst [vmem:[%s1139_s28 + $0x120] sm:$0xff] %v356_v36  ;;  %359 = vst [vmem:[%s1139_s28 + $0x128] sm:$0xff] %v358_v37  ;;  %v362_v39 = vld [vmem:[%s1131_s27 + $0x270] sm:$0xff] }
  0x25   : > { %361 = vst [vmem:[%s1139_s28 + $0x130] sm:$0xff] %v360_v38  ;;  %v364_v40 = vld [vmem:[%s1131_s27 + $0x280] sm:$0xff]  ;;  %v366_v41 = vld [vmem:[%s1131_s27 + $0x290] sm:$0xff]  ;;  %363 = vst [vmem:[%s1139_s28 + $0x138] sm:$0xff] %v362_v39 }
  0x26   : > { %365 = vst [vmem:[%s1139_s28 + $0x140] sm:$0xff] %v364_v40  ;;  %367 = vst [vmem:[%s1139_s28 + $0x148] sm:$0xff] %v366_v41  ;;  %v368_v42 = vld [vmem:[%s1131_s27 + $0x2a0] sm:$0xff]  ;;  %v370_v43 = vld [vmem:[%s1131_s27 + $0x2b0] sm:$0xff] }
  0x27   : > { %v372_v44 = vld [vmem:[%s1131_s27 + $0x2c0] sm:$0xff]  ;;  %369 = vst [vmem:[%s1139_s28 + $0x150] sm:$0xff] %v368_v42  ;;  %371 = vst [vmem:[%s1139_s28 + $0x158] sm:$0xff] %v370_v43  ;;  %v374_v45 = vld [vmem:[%s1131_s27 + $0x2d0] sm:$0xff] }
  0x28   : > { %373 = vst [vmem:[%s1139_s28 + $0x160] sm:$0xff] %v372_v44  ;;  %v376_v46 = vld [vmem:[%s1131_s27 + $0x2e0] sm:$0xff]  ;;  %v378_v47 = vld [vmem:[%s1131_s27 + $0x2f0] sm:$0xff]  ;;  %375 = vst [vmem:[%s1139_s28 + $0x168] sm:$0xff] %v374_v45 }
  0x29   : > { %377 = vst [vmem:[%s1139_s28 + $0x170] sm:$0xff] %v376_v46  ;;  %379 = vst [vmem:[%s1139_s28 + $0x178] sm:$0xff] %v378_v47 }
  0x2a PF: > { %p883_p5 = scmp.ge.s32.totalorder %s1069_s17, 1  ;;  %p384_p6 = scmp.lt.s32.totalorder %s1069_s17, 3 }
  0x2c   : > { %p385_p7 = pnand %p883_p5, %p384_p6 }
  0x2d   : > { %s391_s29 = sand.u32 (!%p385_p7), 1, %s1061_s15   ;;  %v1237_v48 = vld [vmem:[%s1315_s1] sm:$0xff] (!%p385_p7)  ;;  %v1071_v50 = vmov (!%p385_p7), 0   ;;  %v1046_v27 = vld [vmem:[%s1315_s1 + $0x8] ss:$0 sps:$4 sm:$0xff] (!%p385_p7)   ;;  %s884_s12 = sshll.u32 (!%p385_p7), %s877_s3, 1 }
  0x2e   : > { %388 = sbr.rel (%p385_p7) target bundleno = 333 (0x14d), region = 70  ;;  %v474_v49 = vld [vmem:[%s1316_s2] sm:$0xff] (!%p385_p7)  ;;  %804 = vmatprep.mubr.bf16.mxu0 (!%p385_p7), %v1071_v50  ;;  %v887_v51 = vcombine.high (!%p385_p7), %v1237_v48, %v1237_v48  ;;  %971 = vset.pattern.permute.xlu0 (!%p385_p7), %v1071_v50  ;;  %v886_v37 = vcombine.low (!%p385_p7), %v1237_v48, %v1237_v48  ;;  %p418_p8 = scmp.lt.s32.totalorder (!%p385_p7), %s884_s12, 3 }
  0x2f   : > { %s945_s8 = smul.u32 (!%p385_p7), 384, %s391_s29  ;;  %477 = vperm.xlu0 (!%p385_p7), %971, %v474_v49  }
  0x30   : > { %763 = vmatprep.mubr.bf16.mxu1 (!%p385_p7), %v887_v51 }
  0x31   : > { %s1244_s9 = scalar_lea.vmem (!%p385_p7), [#allocation2], %s945_s8 }
  0x32   : > { %v972_v52 = vld [vmem:[%s1244_s9 + $0x4] ss:$8 sps:$4 sm:$0xff] (!%p385_p7)   ;;  %v974_v53 = vld [vmem:[%s1244_s9] ss:$8 sps:$4 sm:$0xff] (!%p385_p7)   ;;  %v975_v54 = vld [vmem:[%s1244_s9 + $0x14] ss:$8 sps:$4 sm:$0xff] (!%p385_p7)  }
  0x33   : > { %731 = vmatprep.subr.bf16.mxu1 (!%p385_p7), %v972_v52  ;;  %v977_v55 = vld [vmem:[%s1244_s9 + $0x10] ss:$8 sps:$4 sm:$0xff] (!%p385_p7)   ;;  %v978_v56 = vld [vmem:[%s1244_s9 + $0x24] ss:$8 sps:$4 sm:$0xff] (!%p385_p7)   ;;  %v980_v57 = vld [vmem:[%s1244_s9 + $0x20] ss:$8 sps:$4 sm:$0xff] (!%p385_p7)  }
  0x34   : > { %732 = vmatpush1.bf16.msra.mxu1 (!%p385_p7), %v974_v53  ;;  %v981_v58 = vld [vmem:[%s1244_s9 + $0x34] ss:$8 sps:$4 sm:$0xff] (!%p385_p7)   ;;  %v983_v59 = vld [vmem:[%s1244_s9 + $0x30] ss:$8 sps:$4 sm:$0xff] (!%p385_p7)   ;;  %v996_v60 = vld [vmem:[%s1244_s9 + $0x104] ss:$8 sps:$4 sm:$0xff] (!%p385_p7)  }
  0x35   : > { %733 = vmatprep.subr.bf16.mxu1 %v975_v54  ;;  %v984_v61 = vld [vmem:[%s1244_s9 + $0x44] ss:$8 sps:$4 sm:$0xff]   ;;  %v1000_v62 = vld [vmem:[%s1244_s9 + $0x100] ss:$8 sps:$4 sm:$0xff]   ;;  %772 = vmatprep.subr.bf16.mxu0 %v996_v60  ;;  %v1002_v63 = vld [vmem:[%s1244_s9 + $0x114] ss:$8 sps:$4 sm:$0xff]  }
  0x36   : > { %773 = vmatpush1.bf16.msra.mxu0 %v1000_v62  ;;  %v986_v0 = vld [vmem:[%s1244_s9 + $0x40] ss:$8 sps:$4 sm:$0xff]   ;;  %v987_v1 = vld [vmem:[%s1244_s9 + $0x54] ss:$8 sps:$4 sm:$0xff]   ;;  %v1006_v2 = vld [vmem:[%s1244_s9 + $0x110] ss:$8 sps:$4 sm:$0xff]  }
  0x37   : > { %774 = vmatprep.subr.bf16.mxu0 %v1002_v63  ;;  %v1008_v3 = vld [vmem:[%s1244_s9 + $0x124] ss:$8 sps:$4 sm:$0xff]   ;;  %v989_v4 = vld [vmem:[%s1244_s9 + $0x50] ss:$8 sps:$4 sm:$0xff]   ;;  %v1012_v5 = vld [vmem:[%s1244_s9 + $0x120] ss:$8 sps:$4 sm:$0xff]  }
  0x38   : > { %734 = vmatpush1.bf16.msra.mxu1 %v977_v55  ;;  %v1014_v6 = vld [vmem:[%s1244_s9 + $0x134] ss:$8 sps:$4 sm:$0xff]   ;;  %v990_v7 = vld [vmem:[%s1244_s9 + $0x64] ss:$8 sps:$4 sm:$0xff]   ;;  %v1018_v8 = vld [vmem:[%s1244_s9 + $0x130] ss:$8 sps:$4 sm:$0xff]  }
  0x39   : > { %735 = vmatprep.subr.bf16.mxu1 %v978_v56  ;;  %v992_v9 = vld [vmem:[%s1244_s9 + $0x60] ss:$8 sps:$4 sm:$0xff]   ;;  %v1020_v10 = vld [vmem:[%s1244_s9 + $0x144] ss:$8 sps:$4 sm:$0xff]   ;;  %v993_v11 = vld [vmem:[%s1244_s9 + $0x74] ss:$8 sps:$4 sm:$0xff]  }
  0x3a   : > { %775 = vmatpush1.bf16.msra.mxu0 %v1006_v2  ;;  %v995_v12 = vld [vmem:[%s1244_s9 + $0x70] ss:$8 sps:$4 sm:$0xff]   ;;  %v1024_v13 = vld [vmem:[%s1244_s9 + $0x140] ss:$8 sps:$4 sm:$0xff]   ;;  %v1026_v14 = vld [vmem:[%s1244_s9 + $0x154] ss:$8 sps:$4 sm:$0xff]  }
  0x3b   : > { %776 = vmatprep.subr.bf16.mxu0 %v1008_v3  ;;  %v998_v15 = vld [vmem:[%s1244_s9 + $0x84] ss:$8 sps:$4 sm:$0xff]   ;;  %v1030_v16 = vld [vmem:[%s1244_s9 + $0x150] ss:$8 sps:$4 sm:$0xff]   ;;  %v1001_v17 = vld [vmem:[%s1244_s9 + $0x80] ss:$8 sps:$4 sm:$0xff]  }
  0x3c   : > { %736 = vmatpush1.bf16.msra.mxu1 %v980_v57  ;;  %v1032_v18 = vld [vmem:[%s1244_s9 + $0x164] ss:$8 sps:$4 sm:$0xff]   ;;  %v1004_v19 = vld [vmem:[%s1244_s9 + $0x94] ss:$8 sps:$4 sm:$0xff]   ;;  %v1036_v20 = vld [vmem:[%s1244_s9 + $0x160] ss:$8 sps:$4 sm:$0xff]  }
  0x3d   : > { %737 = vmatprep.subr.bf16.mxu1 %v981_v58  ;;  %v1007_v21 = vld [vmem:[%s1244_s9 + $0x90] ss:$8 sps:$4 sm:$0xff]   ;;  %v1038_v22 = vld [vmem:[%s1244_s9 + $0x174] ss:$8 sps:$4 sm:$0xff]   ;;  %v1010_v23 = vld [vmem:[%s1244_s9 + $0xa4] ss:$8 sps:$4 sm:$0xff]  }
  0x3e   : > { %777 = vmatpush1.bf16.msra.mxu0 %v1012_v5  ;;  %v1042_v24 = vld [vmem:[%s1244_s9 + $0x170] ss:$8 sps:$4 sm:$0xff]   ;;  %v1013_v25 = vld [vmem:[%s1244_s9 + $0xa0] ss:$8 sps:$4 sm:$0xff]   ;;  %v1016_v26 = vld [vmem:[%s1244_s9 + $0xb4] ss:$8 sps:$4 sm:$0xff]  }
  0x3f   : > { %778 = vmatprep.subr.bf16.mxu0 %v1014_v6  ;;  %v1019_v28 = vld [vmem:[%s1244_s9 + $0xb0] ss:$8 sps:$4 sm:$0xff]   ;;  %v1022_v29 = vld [vmem:[%s1244_s9 + $0xc4] ss:$8 sps:$4 sm:$0xff]   ;;  %v1025_v30 = vld [vmem:[%s1244_s9 + $0xc0] ss:$8 sps:$4 sm:$0xff]  }
  0x40   : > { %738 = vmatpush1.bf16.msra.mxu1 %v983_v59  ;;  %v1028_v31 = vld [vmem:[%s1244_s9 + $0xd4] ss:$8 sps:$4 sm:$0xff]   ;;  %v1031_v32 = vld [vmem:[%s1244_s9 + $0xd0] ss:$8 sps:$4 sm:$0xff]   ;;  %v1034_v33 = vld [vmem:[%s1244_s9 + $0xe4] ss:$8 sps:$4 sm:$0xff]  }
  0x41   : > { %739 = vmatprep.subr.bf16.mxu1 %v984_v61  ;;  %v1037_v34 = vld [vmem:[%s1244_s9 + $0xe0] ss:$8 sps:$4 sm:$0xff]   ;;  %v1040_v35 = vld [vmem:[%s1244_s9 + $0xf4] ss:$8 sps:$4 sm:$0xff]   ;;  %v1043_v36 = vld [vmem:[%s1244_s9 + $0xf0] ss:$8 sps:$4 sm:$0xff]  }
  0x42   : > { %779 = vmatpush1.bf16.msra.mxu0 %v1018_v8  ;;  %s1323_s12 = smov (!%p418_p8, %s884_s12), 3 }
  0x43   : > { %780 = vmatprep.subr.bf16.mxu0 %v1020_v10  ;;  %s885_s13 = sshll.u32 %s1323_s12, 3 }
  0x44   : > { %740 = vmatpush1.bf16.msra.mxu1 %v986_v0  ;;  %s421_s19 = scalar_lea.vmem %s1318_s4, %s885_s13 }
  0x45   : > { %741 = vmatprep.subr.bf16.mxu1 %v987_v1 }
  0x46   : > { %781 = vmatpush1.bf16.msra.mxu0 %v1024_v13 }
  0x47   : > { %782 = vmatprep.subr.bf16.mxu0 %v1026_v14 }
  0x48   : > { %742 = vmatpush1.bf16.msra.mxu1 %v989_v4 }
  0x49   : > { %743 = vmatprep.subr.bf16.mxu1 %v990_v7 }
  0x4a   : > { %783 = vmatpush1.bf16.msra.mxu0 %v1030_v16 }
  0x4b   : > { %784 = vmatprep.subr.bf16.mxu0 %v1032_v18 }
  0x4c   : > { %744 = vmatpush1.bf16.msra.mxu1 %v992_v9 }
  0x4d   : > { %745 = vmatprep.subr.bf16.mxu1 %v993_v11 }
  0x4e   : > { %785 = vmatpush1.bf16.msra.mxu0 %v1036_v20 }
  0x4f   : > { %786 = vmatprep.subr.bf16.mxu0 %v1038_v22 }
  0x50   : > { %746 = vmatpush1.bf16.msra.mxu1 %v995_v12 }
  0x51   : > { %747 = vmatprep.subr.bf16.mxu1 %v998_v15 }
  0x52   : > { %787 = vmatpush1.bf16.msra.mxu0 %v1042_v24 }
  0x54   : > { %748 = vmatpush1.bf16.msra.mxu1 %v1001_v17 }
  0x55   : > { %749 = vmatprep.subr.bf16.mxu1 %v1004_v19  ;;  %805 = vmatmul.mubr.bf16.vlgmr.msra.gmra.mrb[0].mxu0 %v1046_v27 }
  0x58   : > { %750 = vmatpush1.bf16.msra.mxu1 %v1007_v21 }
  0x59   : > { %751 = vmatprep.subr.bf16.mxu1 %v1010_v23 }
  0x5c   : > { %752 = vmatpush1.bf16.msra.mxu1 %v1013_v25 }
  0x5d   : > { %753 = vmatprep.subr.bf16.mxu1 %v1016_v26 }
  0x60   : > { %754 = vmatpush1.bf16.msra.mxu1 %v1019_v28 }
  0x61   : > { %755 = vmatprep.subr.bf16.mxu1 %v1022_v29 }
  0x64   : > { %756 = vmatpush1.bf16.msra.mxu1 %v1025_v30 }
  0x65   : > { %757 = vmatprep.subr.bf16.mxu1 %v1028_v31 }
  0x68   : > { %758 = vmatpush1.bf16.msra.mxu1 %v1031_v32 }
  0x69   : > { %759 = vmatprep.subr.bf16.mxu1 %v1034_v33 }
  0x6c   : > { %760 = vmatpush1.bf16.msra.mxu1 %v1037_v34 }
  0x6d   : > { %761 = vmatprep.subr.bf16.mxu1 %v1040_v35 }
  0x70   : > { %762 = vmatpush1.bf16.msra.mxu1 %v1043_v36 }
  0x73   : > { %764 = vmatmul.mubr.bf16.vlgmr.msra.gmra.mrb[0].mxu1 %v886_v37 }
  0xae   : > { %v478_v42 = vpop.permute.xlu0 %477 }
 0x128   : > { %v806_v38 = vpop.f32.mrb[0].mxu0 }
 0x129   : > { %v808_v39 = vpop.f32.mrb[1].mxu0 }
 0x12a   : > { %v810_v40 = vpop.f32.mrb[2].mxu0 }
 0x12b   : > { %v811_v41 = vpop.f32.mrb[3].mxu0 }
 0x146   : > { %v765_v43 = vpop.f32.mrb[0].mxu1 }
 0x147   : > { %v766_v44 = vadd.f32 %v765_v43, %v478_v42  ;;  %v767_v45 = vpop.f32.mrb[1].mxu1 }
 0x148   : > { %v768_v46 = vadd.f32 %v767_v45, %v478_v42  ;;  %v769_v47 = vpop.f32.mrb[2].mxu1 }
 0x149   : > { %v807_v48 = vadd.f32 %v806_v38, %v766_v44  ;;  %v770_v49 = vpop.f32.mrb[3].mxu1 }
 0x14a   : > { %v809_v50 = vadd.f32 %v808_v39, %v768_v46 }
 0x14b   : > { %813 = vst [vmem:[%s421_s19] sm:$0xff] %v807_v48 }
 0x14c   : > { %814 = vst [vmem:[%s421_s19 + $0x8] sm:$0xff] %v809_v50 }
 0x14d PF: > { %p11_p9 = scmp.ge.s32.totalorder %s1114_s18, 4   ;;  %s1319_s15 = smov %s1065_s16 }
 0x14e   : > { %s1320_s16 = smov %s1123_s21  ;;  %s1321_s17 = smov %s1114_s18 }
 0x14f   :  { %13 = sbr.rel (!%p11_p9) target bundleno = 2 (0x2), region = 109 }

// kernel: cyclegan_forward.11
= control target key start
LH: loop header
LB: loop body
LE: loop exit
PB: predicated region body
PF: predicated region fallthrough
CT: control target
= control target key end

     0   :  { %s1103_s15 = smov 0   ;;  %s1105_s16 = smov 0   ;;  %s1320_s0 = inlined_call_operand.vmem [shape: bf16[384,512], index: 0, kind: input, shape index: {}]   ;;  %s1321_s1 = inlined_call_operand.vmem [shape: bf16[8,384], index: 1, kind: input, shape index: {}]   ;;  %s1322_s2 = inlined_call_operand.vmem [shape: f32[8,1], index: 2, kind: input, shape index: {}]   ;;  %s1323_s3 = inlined_call_operand.vmem [shape: f32[8,1], index: 3, kind: input, shape index: {}]   ;;  %s1324_s4 = inlined_call_operand.vmem [shape: f32[8,512], index: 4, kind: output, shape index: {}]  }
   0x1   :  { %s1107_s17 = smov 0  }
   0x2 LB: > { %s879_s3 = sadd.s32 4294967295, %s1075_s17   ;;  %s1120_s18 = sadd.s32 1, %s1075_s17   ;;  %s1075_s17 = sphi %s1107_s17, %s1327_s17   ;;  %s1071_s16 = sphi %s1105_s16, %s1326_s16   ;;  %s1067_s15 = sphi %s1103_s15, %s1325_s15  }
   0x3   : > { %s18_s19 = ssub.s32 %s1075_s17, %s1120_s18  ;;  %s21_s20 = sadd.s32 1, %s1071_s16 }
   0x4   : > { %p19_p0 = scmp.eq.s32.totalorder %s18_s19, 0  ;;  %p28_p1 = scmp.ne.s32.totalorder %s1071_s16, %s1067_s15 }
   0x5   : > { %p29_p2 = scmp.eq.s32.totalorder %s1075_s17, 0  ;;  %p882_p4 = scmp.ge.s32.totalorder %s1075_s17, 2 }
   0x6   : > { %s1129_s21 = scalar_select %p19_p0, %s1071_s16, %s21_s20  }
   0x7   : > { %p30_p3 = por %p29_p2, %p28_p1  ;;  %152 = sbr.rel (%p882_p4) target bundleno = 42 (0x2a), region = 28 }
   0xe   : > { %155 = sbr.rel (!%p30_p3) target bundleno = 42 (0x2a), region = 32  ;;  %s157_s22 = sand.u32 (%p30_p3), 1, %s1071_s16  }
   0xf   : > { %s941_s23 = sshll.u32 (%p30_p3), %s1075_s17, 3  ;;  %s946_s24 = smul.u32 (%p30_p3), 384, %s157_s22 }
  0x10   : > { %s1137_s27 = scalar_lea.vmem (%p30_p3), %s1320_s0, %s941_s23 }
  0x11   : > { %v284_v0 = vld [vmem:[%s1137_s27] sm:$0xff] (%p30_p3)  ;;  %v286_v1 = vld [vmem:[%s1137_s27 + $0x10] sm:$0xff] (%p30_p3)  ;;  %s1145_s28 = scalar_lea.vmem (%p30_p3), [#allocation2], %s946_s24 }
  0x12   : > { %v288_v2 = vld [vmem:[%s1137_s27 + $0x20] sm:$0xff] (%p30_p3)  ;;  %v290_v3 = vld [vmem:[%s1137_s27 + $0x30] sm:$0xff] (%p30_p3)  ;;  %285 = vst [vmem:[%s1145_s28] sm:$0xff] (%p30_p3), %v284_v0  ;;  %287 = vst [vmem:[%s1145_s28 + $0x8] sm:$0xff] (%p30_p3), %v286_v1 }
  0x13   : > { %v292_v4 = vld [vmem:[%s1137_s27 + $0x40] sm:$0xff] (%p30_p3)  ;;  %v294_v5 = vld [vmem:[%s1137_s27 + $0x50] sm:$0xff] (%p30_p3)  ;;  %289 = vst [vmem:[%s1145_s28 + $0x10] sm:$0xff] (%p30_p3), %v288_v2  ;;  %291 = vst [vmem:[%s1145_s28 + $0x18] sm:$0xff] (%p30_p3), %v290_v3 }
  0x14   : > { %293 = vst [vmem:[%s1145_s28 + $0x20] sm:$0xff] (%p30_p3), %v292_v4  ;;  %295 = vst [vmem:[%s1145_s28 + $0x28] sm:$0xff] (%p30_p3), %v294_v5  ;;  %v296_v6 = vld [vmem:[%s1137_s27 + $0x60] sm:$0xff] (%p30_p3)  ;;  %v298_v7 = vld [vmem:[%s1137_s27 + $0x70] sm:$0xff] (%p30_p3) }
  0x15   : > { %v300_v8 = vld [vmem:[%s1137_s27 + $0x80] sm:$0xff]  ;;  %297 = vst [vmem:[%s1145_s28 + $0x30] sm:$0xff] %v296_v6  ;;  %299 = vst [vmem:[%s1145_s28 + $0x38] sm:$0xff] %v298_v7  ;;  %v302_v9 = vld [vmem:[%s1137_s27 + $0x90] sm:$0xff] }
  0x16   : > { %301 = vst [vmem:[%s1145_s28 + $0x40] sm:$0xff] %v300_v8  ;;  %v304_v10 = vld [vmem:[%s1137_s27 + $0xa0] sm:$0xff]  ;;  %v306_v11 = vld [vmem:[%s1137_s27 + $0xb0] sm:$0xff]  ;;  %303 = vst [vmem:[%s1145_s28 + $0x48] sm:$0xff] %v302_v9 }
  0x17   : > { %305 = vst [vmem:[%s1145_s28 + $0x50] sm:$0xff] %v304_v10  ;;  %307 = vst [vmem:[%s1145_s28 + $0x58] sm:$0xff] %v306_v11  ;;  %v308_v12 = vld [vmem:[%s1137_s27 + $0xc0] sm:$0xff]  ;;  %v310_v13 = vld [vmem:[%s1137_s27 + $0xd0] sm:$0xff] }
  0x18   : > { %v312_v14 = vld [vmem:[%s1137_s27 + $0xe0] sm:$0xff]  ;;  %309 = vst [vmem:[%s1145_s28 + $0x60] sm:$0xff] %v308_v12  ;;  %311 = vst [vmem:[%s1145_s28 + $0x68] sm:$0xff] %v310_v13  ;;  %v314_v15 = vld [vmem:[%s1137_s27 + $0xf0] sm:$0xff] }
  0x19   : > { %313 = vst [vmem:[%s1145_s28 + $0x70] sm:$0xff] %v312_v14  ;;  %v316_v16 = vld [vmem:[%s1137_s27 + $0x100] sm:$0xff]  ;;  %v318_v17 = vld [vmem:[%s1137_s27 + $0x110] sm:$0xff]  ;;  %315 = vst [vmem:[%s1145_s28 + $0x78] sm:$0xff] %v314_v15 }
  0x1a   : > { %317 = vst [vmem:[%s1145_s28 + $0x80] sm:$0xff] %v316_v16  ;;  %319 = vst [vmem:[%s1145_s28 + $0x88] sm:$0xff] %v318_v17  ;;  %v320_v18 = vld [vmem:[%s1137_s27 + $0x120] sm:$0xff]  ;;  %v322_v19 = vld [vmem:[%s1137_s27 + $0x130] sm:$0xff] }
  0x1b   : > { %v324_v20 = vld [vmem:[%s1137_s27 + $0x140] sm:$0xff]  ;;  %321 = vst [vmem:[%s1145_s28 + $0x90] sm:$0xff] %v320_v18  ;;  %323 = vst [vmem:[%s1145_s28 + $0x98] sm:$0xff] %v322_v19  ;;  %v326_v21 = vld [vmem:[%s1137_s27 + $0x150] sm:$0xff] }
  0x1c   : > { %325 = vst [vmem:[%s1145_s28 + $0xa0] sm:$0xff] %v324_v20  ;;  %v328_v22 = vld [vmem:[%s1137_s27 + $0x160] sm:$0xff]  ;;  %v330_v23 = vld [vmem:[%s1137_s27 + $0x170] sm:$0xff]  ;;  %327 = vst [vmem:[%s1145_s28 + $0xa8] sm:$0xff] %v326_v21 }
  0x1d   : > { %329 = vst [vmem:[%s1145_s28 + $0xb0] sm:$0xff] %v328_v22  ;;  %331 = vst [vmem:[%s1145_s28 + $0xb8] sm:$0xff] %v330_v23  ;;  %v332_v24 = vld [vmem:[%s1137_s27 + $0x180] sm:$0xff]  ;;  %v334_v25 = vld [vmem:[%s1137_s27 + $0x190] sm:$0xff] }
  0x1e   : > { %v336_v26 = vld [vmem:[%s1137_s27 + $0x1a0] sm:$0xff]  ;;  %333 = vst [vmem:[%s1145_s28 + $0xc0] sm:$0xff] %v332_v24  ;;  %335 = vst [vmem:[%s1145_s28 + $0xc8] sm:$0xff] %v334_v25  ;;  %v338_v27 = vld [vmem:[%s1137_s27 + $0x1b0] sm:$0xff] }
  0x1f   : > { %337 = vst [vmem:[%s1145_s28 + $0xd0] sm:$0xff] %v336_v26  ;;  %v340_v28 = vld [vmem:[%s1137_s27 + $0x1c0] sm:$0xff]  ;;  %v342_v29 = vld [vmem:[%s1137_s27 + $0x1d0] sm:$0xff]  ;;  %339 = vst [vmem:[%s1145_s28 + $0xd8] sm:$0xff] %v338_v27 }
  0x20   : > { %341 = vst [vmem:[%s1145_s28 + $0xe0] sm:$0xff] %v340_v28  ;;  %343 = vst [vmem:[%s1145_s28 + $0xe8] sm:$0xff] %v342_v29  ;;  %v344_v30 = vld [vmem:[%s1137_s27 + $0x1e0] sm:$0xff]  ;;  %v346_v31 = vld [vmem:[%s1137_s27 + $0x1f0] sm:$0xff] }
  0x21   : > { %v348_v32 = vld [vmem:[%s1137_s27 + $0x200] sm:$0xff]  ;;  %345 = vst [vmem:[%s1145_s28 + $0xf0] sm:$0xff] %v344_v30  ;;  %347 = vst [vmem:[%s1145_s28 + $0xf8] sm:$0xff] %v346_v31  ;;  %v350_v33 = vld [vmem:[%s1137_s27 + $0x210] sm:$0xff] }
  0x22   : > { %349 = vst [vmem:[%s1145_s28 + $0x100] sm:$0xff] %v348_v32  ;;  %v352_v34 = vld [vmem:[%s1137_s27 + $0x220] sm:$0xff]  ;;  %v354_v35 = vld [vmem:[%s1137_s27 + $0x230] sm:$0xff]  ;;  %351 = vst [vmem:[%s1145_s28 + $0x108] sm:$0xff] %v350_v33 }
  0x23   : > { %353 = vst [vmem:[%s1145_s28 + $0x110] sm:$0xff] %v352_v34  ;;  %355 = vst [vmem:[%s1145_s28 + $0x118] sm:$0xff] %v354_v35  ;;  %v356_v36 = vld [vmem:[%s1137_s27 + $0x240] sm:$0xff]  ;;  %v358_v37 = vld [vmem:[%s1137_s27 + $0x250] sm:$0xff] }
  0x24   : > { %v360_v38 = vld [vmem:[%s1137_s27 + $0x260] sm:$0xff]  ;;  %357 = vst [vmem:[%s1145_s28 + $0x120] sm:$0xff] %v356_v36  ;;  %359 = vst [vmem:[%s1145_s28 + $0x128] sm:$0xff] %v358_v37  ;;  %v362_v39 = vld [vmem:[%s1137_s27 + $0x270] sm:$0xff] }
  0x25   : > { %361 = vst [vmem:[%s1145_s28 + $0x130] sm:$0xff] %v360_v38  ;;  %v364_v40 = vld [vmem:[%s1137_s27 + $0x280] sm:$0xff]  ;;  %v366_v41 = vld [vmem:[%s1137_s27 + $0x290] sm:$0xff]  ;;  %363 = vst [vmem:[%s1145_s28 + $0x138] sm:$0xff] %v362_v39 }
  0x26   : > { %365 = vst [vmem:[%s1145_s28 + $0x140] sm:$0xff] %v364_v40  ;;  %367 = vst [vmem:[%s1145_s28 + $0x148] sm:$0xff] %v366_v41  ;;  %v368_v42 = vld [vmem:[%s1137_s27 + $0x2a0] sm:$0xff]  ;;  %v370_v43 = vld [vmem:[%s1137_s27 + $0x2b0] sm:$0xff] }
  0x27   : > { %v372_v44 = vld [vmem:[%s1137_s27 + $0x2c0] sm:$0xff]  ;;  %369 = vst [vmem:[%s1145_s28 + $0x150] sm:$0xff] %v368_v42  ;;  %371 = vst [vmem:[%s1145_s28 + $0x158] sm:$0xff] %v370_v43  ;;  %v374_v45 = vld [vmem:[%s1137_s27 + $0x2d0] sm:$0xff] }
  0x28   : > { %373 = vst [vmem:[%s1145_s28 + $0x160] sm:$0xff] %v372_v44  ;;  %v376_v46 = vld [vmem:[%s1137_s27 + $0x2e0] sm:$0xff]  ;;  %v378_v47 = vld [vmem:[%s1137_s27 + $0x2f0] sm:$0xff]  ;;  %375 = vst [vmem:[%s1145_s28 + $0x168] sm:$0xff] %v374_v45 }
  0x29   : > { %377 = vst [vmem:[%s1145_s28 + $0x170] sm:$0xff] %v376_v46  ;;  %379 = vst [vmem:[%s1145_s28 + $0x178] sm:$0xff] %v378_v47 }
  0x2a PF: > { %p885_p5 = scmp.ge.s32.totalorder %s1075_s17, 1  ;;  %p384_p6 = scmp.lt.s32.totalorder %s1075_s17, 3 }
  0x2c   : > { %p385_p7 = pnand %p885_p5, %p384_p6 }
  0x2d   : > { %s391_s29 = sand.u32 (!%p385_p7), 1, %s1067_s15   ;;  %v1243_v48 = vld [vmem:[%s1321_s1] sm:$0xff] (!%p385_p7)  ;;  %v1077_v50 = vmov (!%p385_p7), 0   ;;  %v1048_v27 = vld [vmem:[%s1321_s1 + $0x8] ss:$0 sps:$4 sm:$0xff] (!%p385_p7)   ;;  %s886_s12 = sshll.u32 (!%p385_p7), %s879_s3, 1 }
  0x2e   : > { %388 = sbr.rel (%p385_p7) target bundleno = 344 (0x158), region = 70  ;;  %v474_v49 = vld [vmem:[%s1322_s2] sm:$0xff] (!%p385_p7)  ;;  %804 = vmatprep.mubr.bf16.mxu0 (!%p385_p7), %v1077_v50  ;;  %v889_v51 = vcombine.high (!%p385_p7), %v1243_v48, %v1243_v48  ;;  %973 = vset.pattern.permute.xlu0 (!%p385_p7), %v1077_v50  ;;  %v888_v37 = vcombine.low (!%p385_p7), %v1243_v48, %v1243_v48  ;;  %p418_p8 = scmp.lt.s32.totalorder (!%p385_p7), %s886_s12, 3 }
  0x2f   : > { %s947_s8 = smul.u32 (!%p385_p7), 384, %s391_s29  ;;  %477 = vperm.xlu0 (!%p385_p7), %973, %v474_v49  }
  0x30   : > { %763 = vmatprep.mubr.bf16.mxu1 (!%p385_p7), %v889_v51 }
  0x31   : > { %s1250_s9 = scalar_lea.vmem (!%p385_p7), [#allocation2], %s947_s8 }
  0x32   : > { %v974_v52 = vld [vmem:[%s1250_s9 + $0x4] ss:$8 sps:$4 sm:$0xff] (!%p385_p7)   ;;  %v976_v53 = vld [vmem:[%s1250_s9] ss:$8 sps:$4 sm:$0xff] (!%p385_p7)   ;;  %v977_v54 = vld [vmem:[%s1250_s9 + $0x14] ss:$8 sps:$4 sm:$0xff] (!%p385_p7)  }
  0x33   : > { %731 = vmatprep.subr.bf16.mxu1 (!%p385_p7), %v974_v52  ;;  %v979_v55 = vld [vmem:[%s1250_s9 + $0x10] ss:$8 sps:$4 sm:$0xff] (!%p385_p7)   ;;  %v980_v56 = vld [vmem:[%s1250_s9 + $0x24] ss:$8 sps:$4 sm:$0xff] (!%p385_p7)   ;;  %v982_v57 = vld [vmem:[%s1250_s9 + $0x20] ss:$8 sps:$4 sm:$0xff] (!%p385_p7)  }
  0x34   : > { %732 = vmatpush1.bf16.msra.mxu1 (!%p385_p7), %v976_v53  ;;  %v983_v58 = vld [vmem:[%s1250_s9 + $0x34] ss:$8 sps:$4 sm:$0xff] (!%p385_p7)   ;;  %v985_v59 = vld [vmem:[%s1250_s9 + $0x30] ss:$8 sps:$4 sm:$0xff] (!%p385_p7)   ;;  %v998_v60 = vld [vmem:[%s1250_s9 + $0x104] ss:$8 sps:$4 sm:$0xff] (!%p385_p7)  }
  0x35   : > { %733 = vmatprep.subr.bf16.mxu1 %v977_v54  ;;  %v986_v61 = vld [vmem:[%s1250_s9 + $0x44] ss:$8 sps:$4 sm:$0xff]   ;;  %v1002_v62 = vld [vmem:[%s1250_s9 + $0x100] ss:$8 sps:$4 sm:$0xff]   ;;  %772 = vmatprep.subr.bf16.mxu0 %v998_v60  ;;  %v1004_v63 = vld [vmem:[%s1250_s9 + $0x114] ss:$8 sps:$4 sm:$0xff]  }
  0x36   : > { %773 = vmatpush1.bf16.msra.mxu0 %v1002_v62  ;;  %v988_v0 = vld [vmem:[%s1250_s9 + $0x40] ss:$8 sps:$4 sm:$0xff]   ;;  %v989_v1 = vld [vmem:[%s1250_s9 + $0x54] ss:$8 sps:$4 sm:$0xff]   ;;  %v1008_v2 = vld [vmem:[%s1250_s9 + $0x110] ss:$8 sps:$4 sm:$0xff]  }
  0x37   : > { %774 = vmatprep.subr.bf16.mxu0 %v1004_v63  ;;  %v1010_v3 = vld [vmem:[%s1250_s9 + $0x124] ss:$8 sps:$4 sm:$0xff]   ;;  %v991_v4 = vld [vmem:[%s1250_s9 + $0x50] ss:$8 sps:$4 sm:$0xff]   ;;  %v1014_v5 = vld [vmem:[%s1250_s9 + $0x120] ss:$8 sps:$4 sm:$0xff]  }
  0x38   : > { %734 = vmatpush1.bf16.msra.mxu1 %v979_v55  ;;  %v1016_v6 = vld [vmem:[%s1250_s9 + $0x134] ss:$8 sps:$4 sm:$0xff]   ;;  %v992_v7 = vld [vmem:[%s1250_s9 + $0x64] ss:$8 sps:$4 sm:$0xff]   ;;  %v1020_v8 = vld [vmem:[%s1250_s9 + $0x130] ss:$8 sps:$4 sm:$0xff]  }
  0x39   : > { %735 = vmatprep.subr.bf16.mxu1 %v980_v56  ;;  %v994_v9 = vld [vmem:[%s1250_s9 + $0x60] ss:$8 sps:$4 sm:$0xff]   ;;  %v1022_v10 = vld [vmem:[%s1250_s9 + $0x144] ss:$8 sps:$4 sm:$0xff]   ;;  %v995_v11 = vld [vmem:[%s1250_s9 + $0x74] ss:$8 sps:$4 sm:$0xff]  }
  0x3a   : > { %775 = vmatpush1.bf16.msra.mxu0 %v1008_v2  ;;  %v997_v12 = vld [vmem:[%s1250_s9 + $0x70] ss:$8 sps:$4 sm:$0xff]   ;;  %v1026_v13 = vld [vmem:[%s1250_s9 + $0x140] ss:$8 sps:$4 sm:$0xff]   ;;  %v1028_v14 = vld [vmem:[%s1250_s9 + $0x154] ss:$8 sps:$4 sm:$0xff]  }
  0x3b   : > { %776 = vmatprep.subr.bf16.mxu0 %v1010_v3  ;;  %v1000_v15 = vld [vmem:[%s1250_s9 + $0x84] ss:$8 sps:$4 sm:$0xff]   ;;  %v1032_v16 = vld [vmem:[%s1250_s9 + $0x150] ss:$8 sps:$4 sm:$0xff]   ;;  %v1003_v17 = vld [vmem:[%s1250_s9 + $0x80] ss:$8 sps:$4 sm:$0xff]  }
  0x3c   : > { %736 = vmatpush1.bf16.msra.mxu1 %v982_v57  ;;  %v1034_v18 = vld [vmem:[%s1250_s9 + $0x164] ss:$8 sps:$4 sm:$0xff]   ;;  %v1006_v19 = vld [vmem:[%s1250_s9 + $0x94] ss:$8 sps:$4 sm:$0xff]   ;;  %v1038_v20 = vld [vmem:[%s1250_s9 + $0x160] ss:$8 sps:$4 sm:$0xff]  }
  0x3d   : > { %737 = vmatprep.subr.bf16.mxu1 %v983_v58  ;;  %v1009_v21 = vld [vmem:[%s1250_s9 + $0x90] ss:$8 sps:$4 sm:$0xff]   ;;  %v1040_v22 = vld [vmem:[%s1250_s9 + $0x174] ss:$8 sps:$4 sm:$0xff]   ;;  %v1012_v23 = vld [vmem:[%s1250_s9 + $0xa4] ss:$8 sps:$4 sm:$0xff]  }
  0x3e   : > { %777 = vmatpush1.bf16.msra.mxu0 %v1014_v5  ;;  %v1044_v24 = vld [vmem:[%s1250_s9 + $0x170] ss:$8 sps:$4 sm:$0xff]   ;;  %v1015_v25 = vld [vmem:[%s1250_s9 + $0xa0] ss:$8 sps:$4 sm:$0xff]   ;;  %v1018_v26 = vld [vmem:[%s1250_s9 + $0xb4] ss:$8 sps:$4 sm:$0xff]  }
  0x3f   : > { %778 = vmatprep.subr.bf16.mxu0 %v1016_v6  ;;  %v1021_v28 = vld [vmem:[%s1250_s9 + $0xb0] ss:$8 sps:$4 sm:$0xff]   ;;  %v1024_v29 = vld [vmem:[%s1250_s9 + $0xc4] ss:$8 sps:$4 sm:$0xff]   ;;  %v1027_v30 = vld [vmem:[%s1250_s9 + $0xc0] ss:$8 sps:$4 sm:$0xff]  }
  0x40   : > { %738 = vmatpush1.bf16.msra.mxu1 %v985_v59  ;;  %v1030_v31 = vld [vmem:[%s1250_s9 + $0xd4] ss:$8 sps:$4 sm:$0xff]   ;;  %v1033_v32 = vld [vmem:[%s1250_s9 + $0xd0] ss:$8 sps:$4 sm:$0xff]   ;;  %v1036_v33 = vld [vmem:[%s1250_s9 + $0xe4] ss:$8 sps:$4 sm:$0xff]  }
  0x41   : > { %739 = vmatprep.subr.bf16.mxu1 %v986_v61  ;;  %v1039_v34 = vld [vmem:[%s1250_s9 + $0xe0] ss:$8 sps:$4 sm:$0xff]   ;;  %v1042_v35 = vld [vmem:[%s1250_s9 + $0xf4] ss:$8 sps:$4 sm:$0xff]   ;;  %v1045_v36 = vld [vmem:[%s1250_s9 + $0xf0] ss:$8 sps:$4 sm:$0xff]  }
  0x42   : > { %779 = vmatpush1.bf16.msra.mxu0 %v1020_v8  ;;  %s1329_s12 = smov (!%p418_p8, %s886_s12), 3 }
  0x43   : > { %780 = vmatprep.subr.bf16.mxu0 %v1022_v10  ;;  %s887_s13 = sshll.u32 %s1329_s12, 3 }
  0x44   : > { %740 = vmatpush1.bf16.msra.mxu1 %v988_v0  ;;  %s421_s19 = scalar_lea.vmem %s1324_s4, %s887_s13 }
  0x45   : > { %741 = vmatprep.subr.bf16.mxu1 %v989_v1 }
  0x46   : > { %781 = vmatpush1.bf16.msra.mxu0 %v1026_v13 }
  0x47   : > { %782 = vmatprep.subr.bf16.mxu0 %v1028_v14 }
  0x48   : > { %742 = vmatpush1.bf16.msra.mxu1 %v991_v4 }
  0x49   : > { %743 = vmatprep.subr.bf16.mxu1 %v992_v7 }
  0x4a   : > { %783 = vmatpush1.bf16.msra.mxu0 %v1032_v16 }
  0x4b   : > { %784 = vmatprep.subr.bf16.mxu0 %v1034_v18 }
  0x4c   : > { %744 = vmatpush1.bf16.msra.mxu1 %v994_v9 }
  0x4d   : > { %745 = vmatprep.subr.bf16.mxu1 %v995_v11 }
  0x4e   : > { %785 = vmatpush1.bf16.msra.mxu0 %v1038_v20 }
  0x4f   : > { %786 = vmatprep.subr.bf16.mxu0 %v1040_v22 }
  0x50   : > { %746 = vmatpush1.bf16.msra.mxu1 %v997_v12 }
  0x51   : > { %747 = vmatprep.subr.bf16.mxu1 %v1000_v15 }
  0x52   : > { %787 = vmatpush1.bf16.msra.mxu0 %v1044_v24 }
  0x54   : > { %748 = vmatpush1.bf16.msra.mxu1 %v1003_v17 }
  0x55   : > { %749 = vmatprep.subr.bf16.mxu1 %v1006_v19  ;;  %805 = vmatmul.mubr.bf16.vlgmr.msra.gmra.mrb[0].mxu0 %v1048_v27 }
  0x58   : > { %750 = vmatpush1.bf16.msra.mxu1 %v1009_v21 }
  0x59   : > { %751 = vmatprep.subr.bf16.mxu1 %v1012_v23 }
  0x5c   : > { %752 = vmatpush1.bf16.msra.mxu1 %v1015_v25 }
  0x5d   : > { %753 = vmatprep.subr.bf16.mxu1 %v1018_v26 }
  0x60   : > { %754 = vmatpush1.bf16.msra.mxu1 %v1021_v28 }
  0x61   : > { %755 = vmatprep.subr.bf16.mxu1 %v1024_v29 }
  0x64   : > { %756 = vmatpush1.bf16.msra.mxu1 %v1027_v30 }
  0x65   : > { %757 = vmatprep.subr.bf16.mxu1 %v1030_v31 }
  0x68   : > { %758 = vmatpush1.bf16.msra.mxu1 %v1033_v32 }
  0x69   : > { %759 = vmatprep.subr.bf16.mxu1 %v1036_v33 }
  0x6c   : > { %760 = vmatpush1.bf16.msra.mxu1 %v1039_v34 }
  0x6d   : > { %761 = vmatprep.subr.bf16.mxu1 %v1042_v35 }
  0x70   : > { %762 = vmatpush1.bf16.msra.mxu1 %v1045_v36 }
  0x73   : > { %764 = vmatmul.mubr.bf16.vlgmr.msra.gmra.mrb[0].mxu1 %v888_v37 }
  0xae   : > { %v478_v42 = vpop.permute.xlu0 %477 }
 0x128   : > { %v806_v38 = vpop.f32.mrb[0].mxu0 }
 0x129   : > { %v808_v39 = vpop.f32.mrb[1].mxu0 }
 0x12a   : > { %v810_v40 = vpop.f32.mrb[2].mxu0 }
 0x12b   : > { %v811_v41 = vpop.f32.mrb[3].mxu0 }
 0x146   : > { %v765_v43 = vpop.f32.mrb[0].mxu1 }
 0x147   : > { %v766_v44 = vadd.f32 %v765_v43, %v478_v42  ;;  %v767_v45 = vpop.f32.mrb[1].mxu1 }
 0x148   : > { %v768_v46 = vadd.f32 %v767_v45, %v478_v42  ;;  %v769_v47 = vpop.f32.mrb[2].mxu1 }
 0x149   : > { %v807_v49 = vadd.f32 %v806_v38, %v766_v44  ;;  %v770_v50 = vpop.f32.mrb[3].mxu1 }
 0x14a   : > { %v809_v51 = vadd.f32 %v808_v39, %v768_v46 }
 0x14b   : > { %1049 = vtanh.f32 %v807_v49 }
 0x14c   : > { %1051 = vtanh.f32 %v809_v51 }
 0x155   : > { %v1050_v48 = vpop.eup %1049 }
 0x156   : > { %v1052_v52 = vpop.eup %1051  ;;  %815 = vst [vmem:[%s421_s19] sm:$0xff] %v1050_v48 }
 0x157   : > { %816 = vst [vmem:[%s421_s19 + $0x8] sm:$0xff] %v1052_v52 }
 0x158 PF: > { %p11_p9 = scmp.ge.s32.totalorder %s1120_s18, 4   ;;  %s1325_s15 = smov %s1071_s16 }
 0x159   : > { %s1326_s16 = smov %s1129_s21  ;;  %s1327_s17 = smov %s1120_s18 }
 0x15a   :  { %13 = sbr.rel (!%p11_p9) target bundleno = 2 (0x2), region = 109 }

// kernel: cyclegan_forward.14
= control target key start
LH: loop header
LB: loop body
LE: loop exit
PB: predicated region body
PF: predicated region fallthrough
CT: control target
= control target key end

     0   :  { %s827_s15 = smov 0   ;;  %s829_s16 = smov 0   ;;  %s957_s0 = inlined_call_operand.vmem [shape: bf16[128,512], index: 0, kind: input, shape index: {}]   ;;  %s958_s1 = inlined_call_operand.vmem [shape: bf16[32,128], index: 1, kind: input, shape index: {}]   ;;  %s959_s2 = inlined_call_operand.vmem [shape: f32[32,1], index: 2, kind: input, shape index: {}]   ;;  %s960_s3 = inlined_call_operand.vmem [shape: f32[32,1], index: 3, kind: input, shape index: {}]   ;;  %s961_s4 = inlined_call_operand.vmem [shape: bf16[32,512], index: 4, kind: output, shape index: {}]  }
   0x1   :  { %s831_s17 = smov 0  }
   0x2 LB: > { %s665_s18 = sadd.s32 4294967295, %s799_s17   ;;  %s844_s19 = sadd.s32 1, %s799_s17   ;;  %s799_s17 = sphi %s831_s17, %s965_s17   ;;  %s795_s16 = sphi %s829_s16, %s964_s16   ;;  %s791_s15 = sphi %s827_s15, %s963_s15  }
   0x3   : > { %s18_s20 = ssub.s32 %s799_s17, %s844_s19  ;;  %s21_s21 = sadd.s32 1, %s795_s16 }
   0x4   : > { %p19_p0 = scmp.eq.s32.totalorder %s18_s20, 0  ;;  %p28_p1 = scmp.ne.s32.totalorder %s795_s16, %s791_s15 }
   0x5   : > { %p29_p2 = scmp.eq.s32.totalorder %s799_s17, 0  ;;  %p121_p3 = scmp.eq.s32.totalorder %s665_s18, 1 }
   0x6   : > { %s855_s22 = scalar_select %p19_p0, %s795_s16, %s21_s21  }
   0x7   : > { %p30_p4 = por %p29_p2, %p28_p1  ;;  %p857_p5 = por %p121_p3, %p28_p1 }
   0x8   : > { %p668_p6 = scmp.ge.s32.totalorder %s799_s17, 2 }
   0xa   : > { %152 = sbr.rel (%p668_p6) target bundleno = 29 (0x1d), region = 28 }
  0x11   : > { %155 = sbr.rel (!%p30_p4) target bundleno = 29 (0x1d), region = 32  ;;  %s157_s24 = sand.u32 (%p30_p4), 1, %s795_s16  }
  0x12   : > { %s702_s25 = sshll.u32 (%p30_p4), %s799_s17, 3  ;;  %s669_s26 = sshll.u32 (%p30_p4), %s157_s24, 7 }
  0x13   : > { %s867_s29 = scalar_lea.vmem (%p30_p4), %s957_s0, %s702_s25  ;;  %s159_s30 = scalar_lea.vmem (%p30_p4), [#allocation2], %s669_s26 }
  0x14   : > { %v220_v0 = vld [vmem:[%s867_s29] sm:$0xff] (%p30_p4)  ;;  %v222_v1 = vld [vmem:[%s867_s29 + $0x10] sm:$0xff] (%p30_p4) }
  0x15   : > { %v224_v2 = vld [vmem:[%s867_s29 + $0x20] sm:$0xff] (%p30_p4)  ;;  %221 = vst [vmem:[%s159_s30] sm:$0xff] (%p30_p4), %v220_v0  ;;  %223 = vst [vmem:[%s159_s30 + $0x8] sm:$0xff] (%p30_p4), %v222_v1  ;;  %v226_v3 = vld [vmem:[%s867_s29 + $0x30] sm:$0xff] (%p30_p4) }
  0x16   : > { %225 = vst [vmem:[%s159_s30 + $0x10] sm:$0xff] (%p30_p4), %v224_v2  ;;  %v228_v4 = vld [vmem:[%s867_s29 + $0x40] sm:$0xff] (%p30_p4)  ;;  %v230_v5 = vld [vmem:[%s867_s29 + $0x50] sm:$0xff] (%p30_p4)  ;;  %227 = vst [vmem:[%s159_s30 + $0x18] sm:$0xff] (%p30_p4), %v226_v3 }
  0x17   : > { %229 = vst [vmem:[%s159_s30 + $0x20] sm:$0xff] (%p30_p4), %v228_v4  ;;  %231 = vst [vmem:[%s159_s30 + $0x28] sm:$0xff] (%p30_p4), %v230_v5  ;;  %v232_v6 = vld [vmem:[%s867_s29 + $0x60] sm:$0xff] (%p30_p4)  ;;  %v234_v7 = vld [vmem:[%s867_s29 + $0x70] sm:$0xff] (%p30_p4) }
  0x18   : > { %v236_v8 = vld [vmem:[%s867_s29 + $0x80] sm:$0xff]  ;;  %233 = vst [vmem:[%s159_s30 + $0x30] sm:$0xff] %v232_v6  ;;  %235 = vst [vmem:[%s159_s30 + $0x38] sm:$0xff] %v234_v7  ;;  %v238_v9 = vld [vmem:[%s867_s29 + $0x90] sm:$0xff] }
  0x19   : > { %237 = vst [vmem:[%s159_s30 + $0x40] sm:$0xff] %v236_v8  ;;  %v240_v10 = vld [vmem:[%s867_s29 + $0xa0] sm:$0xff]  ;;  %v242_v11 = vld [vmem:[%s867_s29 + $0xb0] sm:$0xff]  ;;  %239 = vst [vmem:[%s159_s30 + $0x48] sm:$0xff] %v238_v9 }
  0x1a   : > { %241 = vst [vmem:[%s159_s30 + $0x50] sm:$0xff] %v240_v10  ;;  %243 = vst [vmem:[%s159_s30 + $0x58] sm:$0xff] %v242_v11  ;;  %v244_v12 = vld [vmem:[%s867_s29 + $0xc0] sm:$0xff]  ;;  %v246_v13 = vld [vmem:[%s867_s29 + $0xd0] sm:$0xff] }
  0x1b   : > { %v248_v14 = vld [vmem:[%s867_s29 + $0xe0] sm:$0xff]  ;;  %245 = vst [vmem:[%s159_s30 + $0x60] sm:$0xff] %v244_v12  ;;  %247 = vst [vmem:[%s159_s30 + $0x68] sm:$0xff] %v246_v13  ;;  %v250_v15 = vld [vmem:[%s867_s29 + $0xf0] sm:$0xff] }
  0x1c   : > { %249 = vst [vmem:[%s159_s30 + $0x70] sm:$0xff] %v248_v14  ;;  %251 = vst [vmem:[%s159_s30 + $0x78] sm:$0xff] %v250_v15 }
  0x1d PF: > { %p672_p7 = scmp.ge.s32.totalorder %s799_s17, 1  ;;  %p256_p8 = scmp.lt.s32.totalorder %s799_s17, 3 }
  0x1f   : > { %p257_p9 = pnand %p672_p7, %p256_p8 }
  0x20   : > { %s263_s5 = sand.u32 (!%p257_p9), 1, %s791_s15   ;;  %v801_v16 = vmov (!%p257_p9), 0   ;;  %v312_v17 = vld [vmem:[%s959_s2 + $0x10] sm:$0xff] (!%p257_p9)  ;;  %v310_v18 = vld [vmem:[%s959_s2] sm:$0xff] (!%p257_p9)  ;;  %v313_v26 = vld [vmem:[%s959_s2 + $0x18] sm:$0xff] (!%p257_p9) }
  0x21   : > { %260 = sbr.rel (%p257_p9) target bundleno = 302 (0x12e), region = 70  ;;  %s673_s6 = sshll.u32 (!%p257_p9), %s263_s5, 7  ;;  %458 = vmatprep.mubr.bf16.mxu0 (!%p257_p9), %v801_v16  ;;  %468 = vmatprep.mubr.bf16.mxu1 (!%p257_p9), %v801_v16  ;;  %v311_v28 = vld [vmem:[%s959_s2 + $0x8] sm:$0xff] (!%p257_p9)  ;;  %v487_v31 = vld [vmem:[%s960_s3] sm:$0xff] (!%p257_p9)  ;;  %v490_v34 = vld [vmem:[%s960_s3 + $0x18] sm:$0xff] (!%p257_p9) }
  0x22   : > { %750 = vset.pattern.permute.xlu1 (!%p257_p9), %v801_v16  ;;  %749 = vset.pattern.permute.xlu0 (!%p257_p9), %v801_v16  ;;  %s896_s11 = scalar_lea.vmem (!%p257_p9), [#allocation2], %s673_s6  ;;  %v488_v30 = vld [vmem:[%s960_s3 + $0x8] sm:$0xff] (!%p257_p9)  ;;  %v489_v35 = vld [vmem:[%s960_s3 + $0x10] sm:$0xff] (!%p257_p9)  ;;  %v775_v41 = vld [vmem:[%s958_s1] sm:$0xff] (!%p257_p9)   ;;  %s674_s10 = sshll.u32 (!%p257_p9), %s263_s5, 5 }
  0x23   : > { %v751_v19 = vld [vmem:[%s896_s11 + $0x4] ss:$8 sps:$4 sm:$0xff] (!%p257_p9)   ;;  %326 = vperm.xlu1 (!%p257_p9), %750, %v312_v17   ;;  %316 = vperm.xlu0 (!%p257_p9), %749, %v310_v18   ;;  %v753_v20 = vld [vmem:[%s896_s11] ss:$8 sps:$4 sm:$0xff] (!%p257_p9)   ;;  %v754_v21 = vld [vmem:[%s896_s11 + $0x14] ss:$8 sps:$4 sm:$0xff] (!%p257_p9)  }
  0x24   : > { %426 = vmatprep.subr.bf16.mxu0 (!%p257_p9), %v751_v19  ;;  %708 = vmatprep.subr.bf16.mxu1 (!%p257_p9), %v751_v19  ;;  %v756_v22 = vld [vmem:[%s896_s11 + $0x10] ss:$8 sps:$4 sm:$0xff] (!%p257_p9)   ;;  %v757_v23 = vld [vmem:[%s896_s11 + $0x24] ss:$8 sps:$4 sm:$0xff] (!%p257_p9)   ;;  %v759_v24 = vld [vmem:[%s896_s11 + $0x20] ss:$8 sps:$4 sm:$0xff] (!%p257_p9)  }
  0x25   : > { %427 = vmatpush1.bf16.msra.mxu0 (!%p257_p9), %v753_v20  ;;  %716 = vmatpush1.bf16.msra.mxu1 (!%p257_p9), %v753_v20  ;;  %v760_v25 = vld [vmem:[%s896_s11 + $0x34] ss:$8 sps:$4 sm:$0xff] (!%p257_p9)   ;;  %v762_v27 = vld [vmem:[%s896_s11 + $0x30] ss:$8 sps:$4 sm:$0xff] (!%p257_p9)   ;;  %v763_v29 = vld [vmem:[%s896_s11 + $0x44] ss:$8 sps:$4 sm:$0xff] (!%p257_p9)  }
  0x26   : > { %428 = vmatprep.subr.bf16.mxu0 (!%p257_p9), %v754_v21  ;;  %709 = vmatprep.subr.bf16.mxu1 (!%p257_p9), %v754_v21  ;;  %v765_v32 = vld [vmem:[%s896_s11 + $0x40] ss:$8 sps:$4 sm:$0xff] (!%p257_p9)   ;;  %v766_v33 = vld [vmem:[%s896_s11 + $0x54] ss:$8 sps:$4 sm:$0xff] (!%p257_p9)   ;;  %v768_v36 = vld [vmem:[%s896_s11 + $0x50] ss:$8 sps:$4 sm:$0xff] (!%p257_p9)  }
  0x27   : > { %331 = vperm.xlu1 (!%p257_p9), %750, %v313_v26   ;;  %321 = vperm.xlu0 (!%p257_p9), %749, %v311_v28   ;;  %v769_v37 = vld [vmem:[%s896_s11 + $0x64] ss:$8 sps:$4 sm:$0xff] (!%p257_p9)   ;;  %v771_v38 = vld [vmem:[%s896_s11 + $0x60] ss:$8 sps:$4 sm:$0xff] (!%p257_p9)   ;;  %v772_v39 = vld [vmem:[%s896_s11 + $0x74] ss:$8 sps:$4 sm:$0xff] (!%p257_p9)  }
  0x28   : > { %v774_v40 = vld [vmem:[%s896_s11 + $0x70] ss:$8 sps:$4 sm:$0xff]   ;;  %v776_v42 = vld [vmem:[%s958_s1 + $0x8] sm:$0xff]   ;;  %s286_s15 = scalar_lea.vmem [#allocation3], %s674_s10  ;;  %s707_s5 = sshll.u32 (%p857_p5), %s665_s18, 3 }
  0x29   : > { %429 = vmatpush1.bf16.msra.mxu0 %v756_v22  ;;  %717 = vmatpush1.bf16.msra.mxu1 %v756_v22  ;;  %s564_s13 = scalar_lea.vmem (%p857_p5), %s961_s4, %s707_s5 }
  0x2a   : > { %430 = vmatprep.subr.bf16.mxu0 %v757_v23  ;;  %710 = vmatprep.subr.bf16.mxu1 %v757_v23 }
  0x2b   : > { %498 = vperm.xlu1 %750, %v488_v30   ;;  %493 = vperm.xlu0 %749, %v487_v31  }
  0x2d   : > { %431 = vmatpush1.bf16.msra.mxu0 %v759_v24  ;;  %718 = vmatpush1.bf16.msra.mxu1 %v759_v24 }
  0x2e   : > { %432 = vmatprep.subr.bf16.mxu0 %v760_v25  ;;  %711 = vmatprep.subr.bf16.mxu1 %v760_v25 }
  0x2f   : > { %508 = vperm.xlu1 %750, %v490_v34   ;;  %503 = vperm.xlu0 %749, %v489_v35  }
  0x31   : > { %433 = vmatpush1.bf16.msra.mxu0 %v762_v27  ;;  %719 = vmatpush1.bf16.msra.mxu1 %v762_v27 }
  0x32   : > { %434 = vmatprep.subr.bf16.mxu0 %v763_v29  ;;  %712 = vmatprep.subr.bf16.mxu1 %v763_v29 }
  0x35   : > { %435 = vmatpush1.bf16.msra.mxu0 %v765_v32  ;;  %720 = vmatpush1.bf16.msra.mxu1 %v765_v32 }
  0x36   : > { %436 = vmatprep.subr.bf16.mxu0 %v766_v33  ;;  %713 = vmatprep.subr.bf16.mxu1 %v766_v33 }
  0x39   : > { %437 = vmatpush1.bf16.msra.mxu0 %v768_v36  ;;  %721 = vmatpush1.bf16.msra.mxu1 %v768_v36 }
  0x3a   : > { %438 = vmatprep.subr.bf16.mxu0 %v769_v37  ;;  %714 = vmatprep.subr.bf16.mxu1 %v769_v37 }
  0x3d   : > { %439 = vmatpush1.bf16.msra.mxu0 %v771_v38  ;;  %722 = vmatpush1.bf16.msra.mxu1 %v771_v38 }
  0x3e   : > { %440 = vmatprep.subr.bf16.mxu0 %v772_v39  ;;  %715 = vmatprep.subr.bf16.mxu1 %v772_v39 }
  0x41   : > { %441 = vmatpush1.bf16.msra.mxu0 %v774_v40  ;;  %723 = vmatpush1.bf16.msra.mxu1 %v774_v40 }
  0x44   : > { %459 = vmatmul.mubr.bf16.vlgmr.msra.gmra.mrb[0].mxu0 %v775_v41  ;;  %469 = vmatmul.mubr.bf16.vlgmr.msra.gmra.mrb[0].mxu1 %v776_v42 }
  0xa2   : > { %v317_v43 = vpop.permute.xlu0 %316  ;;  %v327_v44 = vpop.permute.xlu1 %326 }
  0xa6   : > { %v322_v45 = vpop.permute.xlu0 %321  ;;  %v332_v46 = vpop.permute.xlu1 %331 }
  0xaa   : > { %v494_v47 = vpop.permute.xlu0 %493  ;;  %v499_v48 = vpop.permute.xlu1 %498 }
  0xae   : > { %v504_v49 = vpop.permute.xlu0 %503  ;;  %v509_v10 = vpop.permute.xlu1 %508 }
 0x117   : > { %v460_v50 = vpop.f32.mrb[0].mxu0  ;;  %v470_v51 = vpop.f32.mrb[0].mxu1 }
 0x118   : > { %v461_v52 = vadd.f32 %v460_v50, %v317_v43  ;;  %v471_v53 = vadd.f32 %v470_v51, %v327_v44  ;;  %v462_v54 = vpop.f32.mrb[1].mxu0  ;;  %v472_v55 = vpop.f32.mrb[1].mxu1 }
 0x119   : > { %v463_v56 = vadd.f32 %v462_v54, %v317_v43  ;;  %v473_v57 = vadd.f32 %v472_v55, %v327_v44  ;;  %v464_v58 = vpop.f32.mrb[2].mxu0  ;;  %v474_v59 = vpop.f32.mrb[2].mxu1 }
 0x11a   : > { %vm479_vm0 = vcmp.gt.f32.partialorder %v461_v52, 0.0  ;;  %v511_v60 = vmul.f32 %v494_v47, %v461_v52  ;;  %vm483_vm1 = vcmp.gt.f32.partialorder %v471_v53, 0.0  ;;  %v515_v61 = vmul.f32 %v504_v49, %v471_v53  ;;  %v466_v62 = vpop.f32.mrb[3].mxu0  ;;  %v476_v63 = vpop.f32.mrb[3].mxu1 }
 0x11b   : > { %vm480_vm2 = vcmp.gt.f32.partialorder %v463_v56, 0.0  ;;  %v512_v0 = vmul.f32 %v494_v47, %v463_v56  ;;  %vm484_vm3 = vcmp.gt.f32.partialorder %v473_v57, 0.0  ;;  %v516_v1 = vmul.f32 %v504_v49, %v473_v57 }
 0x11c   : > { %v519_v2 = vsel %vm479_vm0, %v461_v52, %v511_v60  ;;  %v523_v3 = vsel %vm483_vm1, %v471_v53, %v515_v61  ;;  %v465_v4 = vadd.f32 %v464_v58, %v322_v45  ;;  %v475_v5 = vadd.f32 %v474_v59, %v332_v46 }
 0x11d   : > { %v520_v6 = vsel %vm480_vm2, %v463_v56, %v512_v0  ;;  %v524_v7 = vsel %vm484_vm3, %v473_v57, %v516_v1  ;;  %v467_v8 = vadd.f32 %v466_v62, %v322_v45  ;;  %v477_v9 = vadd.f32 %v476_v63, %v332_v46 }
 0x11e   : > { %v703_v11 = vpack.c.bf16 %v520_v6, %v519_v2  ;;  %v705_v12 = vpack.c.bf16 %v524_v7, %v523_v3  ;;  %vm481_vm4 = vcmp.gt.f32.partialorder %v465_v4, 0.0  ;;  %v513_v13 = vmul.f32 %v499_v48, %v465_v4 }
 0x11f   : > { %vm485_vm5 = vcmp.gt.f32.partialorder %v475_v5, 0.0  ;;  %v517_v14 = vmul.f32 %v509_v10, %v475_v5  ;;  %vm482_vm6 = vcmp.gt.f32.partialorder %v467_v8, 0.0  ;;  %v514_v15 = vmul.f32 %v499_v48, %v467_v8  ;;  %561 = sbr.rel (!%p857_p5) target bundleno = 302 (0x12e), region = 78 }
 0x120   : > { %551 = vst [vmem:[%s286_s15] sm:$0xff] %v703_v11  ;;  %553 = vst [vmem:[%s286_s15 + $0x10] sm:$0xff] %v705_v12  ;;  %v521_v16 = vsel %vm481_vm4, %v465_v4, %v513_v13  ;;  %vm486_vm7 = vcmp.gt.f32.partialorder %v477_v9, 0.0  ;;  %v518_v17 = vmul.f32 %v509_v10, %v477_v9 }
 0x121   : > { %v525_v18 = vsel %vm485_vm5, %v475_v5, %v517_v14  ;;  %v522_v19 = vsel %vm482_vm6, %v467_v8, %v514_v15 }
 0x122   : > { %v704_v20 = vpack.c.bf16 %v522_v19, %v521_v16  ;;  %v526_v21 = vsel %vm486_vm7, %v477_v9, %v518_v17 }
 0x123   : > { %v706_v22 = vpack.c.bf16 %v526_v21, %v525_v18 }
 0x124   : > { %552 = vst [vmem:[%s286_s15 + $0x8] sm:$0xff] %v704_v20 }
 0x125   : > { %554 = vst [vmem:[%s286_s15 + $0x18] sm:$0xff] %v706_v22 }
 0x127   : > { %v598_v23 = vld [vmem:[%s286_s15] sm:$0xff]  ;;  %v602_v25 = vld [vmem:[%s286_s15 + $0x10] sm:$0xff] }
 0x128   : > { %599 = vst [vmem:[%s564_s13] sm:$0xff] %v598_v23  ;;  %603 = vst [vmem:[%s564_s13 + $0x20] sm:$0xff] %v602_v25 }
 0x12b   : > { %v600_v24 = vld [vmem:[%s286_s15 + $0x8] sm:$0xff] }
 0x12c   : > { %v604_v26 = vld [vmem:[%s286_s15 + $0x18] sm:$0xff]  ;;  %601 = vst [vmem:[%s564_s13 + $0x10] sm:$0xff] %v600_v24 }
 0x12d   : > { %605 = vst [vmem:[%s564_s13 + $0x30] sm:$0xff] %v604_v26 }
 0x12e PF: > { %p11_p10 = scmp.ge.s32.totalorder %s844_s19, 4   ;;  %s963_s15 = smov %s795_s16 }
 0x12f   : > { %s964_s16 = smov %s855_s22  ;;  %s965_s17 = smov %s844_s19 }
 0x130   :  { %13 = sbr.rel (!%p11_p10) target bundleno = 2 (0x2), region = 147 }

</bundles_post_ra>
